<compile_context>
chip_gen: v7x
topology: tpu7x:2x2x1
jax: 0.10.0
libtpu: 0.0.40
codegen_flags: <defaults>
</compile_context>

<pallas_src>
import functools

import jax
import jax.numpy as jnp
from jax import lax
from jax.experimental import pallas as pl
from jax.experimental.pallas import tpu as pltpu

LANE = 128


def _round_up(x, m):
    return (x + m - 1) // m * m


def dan2_kernel(num_classes, seq_len, tile_b,
                ids_ref, emb_hbm, w1_ref, b1_ref, w2_ref, b2_ref,
                o_ref, gbuf, gsem):
    """One grid step: gather + mean-pool TILE_B batch rows, run the MLP head.

    ids_ref : (B_pad, L)      int32, SMEM (scalar prefetch)
    emb_hbm : (V, D_pad)      f32, HBM — manual DMA gather source
    w1_ref  : (D_pad, H_pad)  f32, VMEM resident
    b1_ref  : (1, H_pad)      f32
    w2_ref  : (H_pad, 128)    f32  (class dim zero-padded to a full lane tile)
    b2_ref  : (1, 128)        f32
    o_ref   : (TILE_B, 128)   f32 output block (lanes >= num_classes are junk)
    gbuf    : (2, L, D_pad)   f32 scratch, double-buffered gather target
    gsem    : (2, L)          DMA semaphores (one per in-flight row DMA)
    """
    i = pl.program_id(0)
    L = seq_len
    d_pad = gbuf.shape[-1]

    def issue_row(r_local, slot):
        row = i * tile_b + r_local

        @pl.loop(0, L)
        def _(l):
            tok = ids_ref[row, l]
            pltpu.make_async_copy(
                emb_hbm.at[pl.ds(tok, 1)],
                gbuf.at[slot, pl.ds(l, 1)],
                gsem.at[slot, l],
            ).start()

    def wait_row(slot):
        @pl.loop(0, L)
        def _(l):
            pltpu.make_async_copy(
                emb_hbm.at[pl.ds(0, 1)],
                gbuf.at[slot, pl.ds(l, 1)],
                gsem.at[slot, l],
            ).wait()

    # Prime the DMA pipeline with the first batch row of this tile.
    issue_row(0, 0)

    row_sums = []
    lchunk = min(L, 64)
    for r in range(tile_b):                    # static unroll (tile_b is small)
        slot = r % 2
        wait_row(slot)
        # Prefetch the next row's embeddings into the other slot while we
        # reduce this one (overlaps DMA with the sequence reduction).
        if r + 1 < tile_b:
            issue_row(r + 1, 1 - slot)

        rowsum = jnp.zeros((1, d_pad), jnp.float32)
        for c in range(0, L, lchunk):          # chunked reduction over L
            n = min(lchunk, L - c)
            rowsum = rowsum + jnp.sum(
                gbuf[slot, pl.ds(c, n), :], axis=0, keepdims=True)
        row_sums.append(rowsum)

    pooled = jnp.concatenate(row_sums, axis=0) * (1.0 / L)     # (TILE_B, D_pad)

    # layer1 + ReLU
    h = jnp.dot(pooled, w1_ref[...], preferred_element_type=jnp.float32)
    h = jnp.maximum(h + b1_ref[...], 0.0)

    # layer2 + ReLU (class dim padded to 128 lanes -> dense MXU matmul + store)
    logits = jnp.dot(h, w2_ref[...], preferred_element_type=jnp.float32)
    logits = jnp.maximum(logits + b2_ref[...], 0.0)

    # Mask padded class lanes AFTER the ReLU, before log-softmax.
    lane = lax.broadcasted_iota(jnp.int32, logits.shape, 1)
    logits = jnp.where(lane < num_classes, logits, -jnp.inf)

    # LogSoftmax over the class axis.
    m = jnp.max(logits, axis=-1, keepdims=True)
    shifted = logits - m
    lse = jnp.log(jnp.sum(jnp.exp(shifted), axis=-1, keepdims=True))
    o_ref[...] = shifted - lse


def prepare_params(emb_table, w1, b1, w2, b2, num_classes=2):
    """One-time parameter prep (hoisted out of the forward path):
    transpose nn.Linear weights to (in, out), zero-pad feature dims to
    multiples of 128, pad the class dim to a full 128-lane tile."""
    V, D = emb_table.shape
    H = w1.shape[0]
    d_pad = _round_up(D, LANE)
    h_pad = _round_up(H, LANE)
    c_pad = LANE  # real classes live in lanes [0, num_classes)

    # TODO(synk): a bf16 (u32-paired) table would halve the HBM gather read,
    # but single bf16 rows are not word-aligned for DMA writes, so keep f32.
    emb_p = jnp.zeros((V, d_pad), jnp.float32).at[:, :D].set(
        emb_table.astype(jnp.float32))
    w1_p = jnp.zeros((d_pad, h_pad), jnp.float32).at[:D, :H].set(
        w1.T.astype(jnp.float32))
    b1_p = jnp.zeros((1, h_pad), jnp.float32).at[0, :H].set(
        b1.astype(jnp.float32))
    w2_p = jnp.zeros((h_pad, c_pad), jnp.float32).at[:H, :num_classes].set(
        w2.T.astype(jnp.float32))
    b2_p = jnp.zeros((1, c_pad), jnp.float32).at[0, :num_classes].set(
        b2.astype(jnp.float32))
    return {"emb": emb_p, "w1": w1_p, "b1": b1_p, "w2": w2_p, "b2": b2_p}


def dan2_forward(x_ids, params, *, num_classes=2, tile_b=8):
    """x_ids: (B, L) int token ids. Returns (B, num_classes) f32 log-probs."""
    emb_p = params["emb"]
    w1_p, b1_p = params["w1"], params["b1"]
    w2_p, b2_p = params["w2"], params["b2"]

    B, L = x_ids.shape
    d_pad = emb_p.shape[1]
    h_pad = w1_p.shape[1]
    c_pad = w2_p.shape[1]

    b_pad = _round_up(B, tile_b)
    ids_padded = jnp.zeros((b_pad, L), jnp.int32).at[:B, :].set(
        x_ids.astype(jnp.int32))
    n_tiles = b_pad // tile_b

    kernel = functools.partial(dan2_kernel, num_classes, L, tile_b)

    out_pad = pl.pallas_call(
        kernel,
        out_shape=jax.ShapeDtypeStruct((b_pad, c_pad), jnp.float32),
        grid_spec=pltpu.PrefetchScalarGridSpec(
            num_scalar_prefetch=1,                  # token ids -> SMEM
            grid=(n_tiles,),
            in_specs=[
                pl.BlockSpec(memory_space=pl.ANY),                       # emb table (HBM)
                pl.BlockSpec((d_pad, h_pad), lambda i, _ids: (0, 0)),    # w1 (VMEM resident)
                pl.BlockSpec((1, h_pad), lambda i, _ids: (0, 0)),        # b1
                pl.BlockSpec((h_pad, c_pad), lambda i, _ids: (0, 0)),    # w2
                pl.BlockSpec((1, c_pad), lambda i, _ids: (0, 0)),        # b2
            ],
            out_specs=pl.BlockSpec((tile_b, c_pad), lambda i, _ids: (i, 0)),
            scratch_shapes=[
                pltpu.VMEM((2, L, d_pad), jnp.float32),   # double-buffered gather target
                pltpu.SemaphoreType.DMA((2, L)),          # one sem per in-flight row DMA
            ],
        ),
        compiler_params=pltpu.CompilerParams(
            dimension_semantics=("parallel",),            # shard batch tiles across TCs (v7x)
            vmem_limit_bytes=32 * 1024 * 1024,
        ),
    )(ids_padded, emb_p, w1_p, b1_p, w2_p, b2_p)

    return out_pad[:B, :num_classes]


def reference_forward(x_ids, emb_table, w1, b1, w2, b2):
    emb = jnp.take(emb_table, x_ids, axis=0).astype(jnp.float32)
    pooled = jnp.mean(emb, axis=1)
    h = jnp.maximum(pooled @ w1.T + b1, 0.0)
    logits = jnp.maximum(h @ w2.T + b2, 0.0)
    return jax.nn.log_softmax(logits, axis=1)


if __name__ == "__main__":
    # Small shapes consistent with the module (DAN over BPE token ids).
    B, L = 16, 16            # batch, sequence length
    V, D, H = 512, 50, 100   # vocab, embedding_dim=50, hidden_size=100

    key = jax.random.PRNGKey(0)
    k_ids, k_emb, k_w1, k_b1, k_w2, k_b2 = jax.random.split(key, 6)

    x_ids = jax.random.randint(k_ids, (B, L), 0, V, dtype=jnp.int32)
    emb_table = jax.random.normal(k_emb, (V, D), dtype=jnp.float32) * 0.5
    w1 = jax.random.normal(k_w1, (H, D), dtype=jnp.float32) * 0.1
    b1 = jax.random.normal(k_b1, (H,), dtype=jnp.float32) * 0.1
    w2 = jax.random.normal(k_w2, (2, H), dtype=jnp.float32) * 0.1
    b2 = jax.random.normal(k_b2, (2,), dtype=jnp.float32) * 0.1

    params = prepare_params(emb_table, w1, b1, w2, b2)   # one-time weight prep
    out = dan2_forward(x_ids, params, tile_b=8)
    out = jax.block_until_ready(out)

    ref = reference_forward(x_ids, emb_table, w1, b1, w2, b2)
    assert out.shape == (B, 2)
    max_err = float(jnp.max(jnp.abs(out - ref)))
    assert max_err < 1e-2, f"mismatch vs reference: max abs err {max_err}"

    print("KERNEL_OK")
</pallas_src>

<mosaic_0001>
module attributes {stable_mosaic.version = 11 : i64} {
  func.func @dan2_kernel(%arg0: i32, %arg1: memref<16x16xi32, #tpu.memory_space<smem>>, %arg2: memref<512x128xf32, #tpu.memory_space<any>>, %arg3: memref<128x128xf32, #tpu.memory_space<vmem>>, %arg4: memref<1x128xf32, #tpu.memory_space<vmem>>, %arg5: memref<128x128xf32, #tpu.memory_space<vmem>>, %arg6: memref<1x128xf32, #tpu.memory_space<vmem>>, %arg7: memref<8x128xf32, #tpu.memory_space<vmem>>, %arg8: memref<2x16x128xf32, #tpu.memory_space<vmem>>, %arg9: memref<2x16x!tpu.dma_semaphore, #tpu.memory_space<semaphore_mem>>) attributes {dimension_semantics = [#tpu.dimension_semantics<parallel>], iteration_bounds = array<i64: 2>, scalar_prefetch = 1 : i64, scratch_operands = 2 : i64, tpu.core_type = #tpu.core_type<tc>, window_params = [{}, {pipeline_mode = #tpu.pipeline_mode<synchronous>, transform_indices = @transform_1, window_bounds = array<i64: 128, 128>}, {pipeline_mode = #tpu.pipeline_mode<synchronous>, transform_indices = @transform_2, window_bounds = array<i64: 1, 128>}, {pipeline_mode = #tpu.pipeline_mode<synchronous>, transform_indices = @transform_3, window_bounds = array<i64: 128, 128>}, {pipeline_mode = #tpu.pipeline_mode<synchronous>, transform_indices = @transform_4, window_bounds = array<i64: 1, 128>}, {transform_indices = @transform_5, window_bounds = array<i64: 8, 128>}]} {
    %c8_i32 = arith.constant 8 : i32
    %0 = arith.muli %arg0, %c8_i32 : i32
    %c0_i32 = arith.constant 0 : i32
    %1 = arith.addi %0, %c0_i32 : i32
    %c0_i32_0 = arith.constant 0 : i32
    %c16_i32 = arith.constant 16 : i32
    %2 = arith.addi %c0_i32_0, %c16_i32 : i32
    %c1_i32 = arith.constant 1 : i32
    scf.for %arg10 = %c0_i32_0 to %2 step %c1_i32  : i32 {
      %c1_i32_126 = arith.constant 1 : i32
      %113 = arith.muli %arg10, %c1_i32_126 : i32
      %c0_i32_127 = arith.constant 0 : i32
      %114 = arith.addi %c0_i32_127, %113 : i32
      %115 = arith.index_cast %1 : i32 to index
      %116 = arith.index_cast %114 : i32 to index
      %117 = memref.load %arg1[%115, %116] : memref<16x16xi32, #tpu.memory_space<smem>>
      %c0_i32_128 = arith.constant 0 : i32
      %c0_i32_129 = arith.constant 0 : i32
      %c0_i32_130 = arith.constant 0 : i32
      %118 = tpu.memref_slice %arg2[%117, %c0_i32_130] : memref<512x128xf32, #tpu.memory_space<any>> -> memref<1x128xf32, #tpu.memory_space<any>>
      %c0_i32_131 = arith.constant 0 : i32
      %119 = tpu.memref_slice %arg8[%c0_i32_128, %114, %c0_i32_131] : memref<2x16x128xf32, #tpu.memory_space<vmem>> -> memref<1x1x128xf32, #tpu.memory_space<vmem>>
      %120 = tpu.memref_squeeze %119 : memref<1x1x128xf32, #tpu.memory_space<vmem>> -> memref<1x128xf32, #tpu.memory_space<vmem>>
      %121 = tpu.memref_slice %arg9[%c0_i32_129, %114] : memref<2x16x!tpu.dma_semaphore, #tpu.memory_space<semaphore_mem>> -> memref<1x1x!tpu.dma_semaphore, #tpu.memory_space<semaphore_mem>>
      %122 = tpu.memref_squeeze %121 : memref<1x1x!tpu.dma_semaphore, #tpu.memory_space<semaphore_mem>> -> memref<!tpu.dma_semaphore, #tpu.memory_space<semaphore_mem>>
      tpu.enqueue_dma source(%118 : memref<1x128xf32, #tpu.memory_space<any>>) target(%120 : memref<1x128xf32, #tpu.memory_space<vmem>>) target_semaphore(%122 : memref<!tpu.dma_semaphore, #tpu.memory_space<semaphore_mem>>)
    }
    %c16_i32_1 = arith.constant 16 : i32
    %c0_i32_2 = arith.constant 0 : i32
    %c16_i32_3 = arith.constant 16 : i32
    %3 = arith.addi %c0_i32_2, %c16_i32_3 : i32
    %c1_i32_4 = arith.constant 1 : i32
    scf.for %arg10 = %c0_i32_2 to %3 step %c1_i32_4  : i32 {
      %c1_i32_126 = arith.constant 1 : i32
      %113 = arith.muli %arg10, %c1_i32_126 : i32
      %c0_i32_127 = arith.constant 0 : i32
      %114 = arith.addi %c0_i32_127, %113 : i32
      %c0_i32_128 = arith.constant 0 : i32
      %c0_i32_129 = arith.constant 0 : i32
      %c0_i32_130 = arith.constant 0 : i32
      %c0_i32_131 = arith.constant 0 : i32
      %115 = tpu.memref_slice %arg2[%c0_i32_130, %c0_i32_131] : memref<512x128xf32, #tpu.memory_space<any>> -> memref<1x128xf32, #tpu.memory_space<any>>
      %c0_i32_132 = arith.constant 0 : i32
      %116 = tpu.memref_slice %arg8[%c0_i32_128, %114, %c0_i32_132] : memref<2x16x128xf32, #tpu.memory_space<vmem>> -> memref<1x1x128xf32, #tpu.memory_space<vmem>>
      %117 = tpu.memref_squeeze %116 : memref<1x1x128xf32, #tpu.memory_space<vmem>> -> memref<1x128xf32, #tpu.memory_space<vmem>>
      %118 = tpu.memref_slice %arg9[%c0_i32_129, %114] : memref<2x16x!tpu.dma_semaphore, #tpu.memory_space<semaphore_mem>> -> memref<1x1x!tpu.dma_semaphore, #tpu.memory_space<semaphore_mem>>
      %119 = tpu.memref_squeeze %118 : memref<1x1x!tpu.dma_semaphore, #tpu.memory_space<semaphore_mem>> -> memref<!tpu.dma_semaphore, #tpu.memory_space<semaphore_mem>>
      tpu.wait_dma2 semaphore(%119 : memref<!tpu.dma_semaphore, #tpu.memory_space<semaphore_mem>>) src(%115 : memref<1x128xf32, #tpu.memory_space<any>>) dst(%117 : memref<1x128xf32, #tpu.memory_space<vmem>>)
    }
    %c16_i32_5 = arith.constant 16 : i32
    %c8_i32_6 = arith.constant 8 : i32
    %4 = arith.muli %arg0, %c8_i32_6 : i32
    %c1_i32_7 = arith.constant 1 : i32
    %5 = arith.addi %4, %c1_i32_7 : i32
    %c0_i32_8 = arith.constant 0 : i32
    %c16_i32_9 = arith.constant 16 : i32
    %6 = arith.addi %c0_i32_8, %c16_i32_9 : i32
    %c1_i32_10 = arith.constant 1 : i32
    scf.for %arg10 = %c0_i32_8 to %6 step %c1_i32_10  : i32 {
      %c1_i32_126 = arith.constant 1 : i32
      %113 = arith.muli %arg10, %c1_i32_126 : i32
      %c0_i32_127 = arith.constant 0 : i32
      %114 = arith.addi %c0_i32_127, %113 : i32
      %115 = arith.index_cast %5 : i32 to index
      %116 = arith.index_cast %114 : i32 to index
      %117 = memref.load %arg1[%115, %116] : memref<16x16xi32, #tpu.memory_space<smem>>
      %c1_i32_128 = arith.constant 1 : i32
      %c1_i32_129 = arith.constant 1 : i32
      %c0_i32_130 = arith.constant 0 : i32
      %118 = tpu.memref_slice %arg2[%117, %c0_i32_130] : memref<512x128xf32, #tpu.memory_space<any>> -> memref<1x128xf32, #tpu.memory_space<any>>
      %c0_i32_131 = arith.constant 0 : i32
      %119 = tpu.memref_slice %arg8[%c1_i32_128, %114, %c0_i32_131] : memref<2x16x128xf32, #tpu.memory_space<vmem>> -> memref<1x1x128xf32, #tpu.memory_space<vmem>>
      %120 = tpu.memref_squeeze %119 : memref<1x1x128xf32, #tpu.memory_space<vmem>> -> memref<1x128xf32, #tpu.memory_space<vmem>>
      %121 = tpu.memref_slice %arg9[%c1_i32_129, %114] : memref<2x16x!tpu.dma_semaphore, #tpu.memory_space<semaphore_mem>> -> memref<1x1x!tpu.dma_semaphore, #tpu.memory_space<semaphore_mem>>
      %122 = tpu.memref_squeeze %121 : memref<1x1x!tpu.dma_semaphore, #tpu.memory_space<semaphore_mem>> -> memref<!tpu.dma_semaphore, #tpu.memory_space<semaphore_mem>>
      tpu.enqueue_dma source(%118 : memref<1x128xf32, #tpu.memory_space<any>>) target(%120 : memref<1x128xf32, #tpu.memory_space<vmem>>) target_semaphore(%122 : memref<!tpu.dma_semaphore, #tpu.memory_space<semaphore_mem>>)
    }
    %c16_i32_11 = arith.constant 16 : i32
    %cst = arith.constant 0.000000e+00 : f32
    %7 = vector.broadcast %cst : f32 to vector<1x128xf32>
    %c0 = arith.constant 0 : index
    %c0_12 = arith.constant 0 : index
    %c0_13 = arith.constant 0 : index
    %8 = vector.load %arg8[%c0, %c0_12, %c0_13] : memref<2x16x128xf32, #tpu.memory_space<vmem>>, vector<1x16x128xf32>
    %9 = vector.shape_cast %8 : vector<1x16x128xf32> to vector<16x128xf32>
    %cst_14 = arith.constant dense<0.000000e+00> : vector<128xf32>
    %10 = vector.multi_reduction <add>, %9, %cst_14 [0] : vector<16x128xf32> to vector<128xf32>
    %11 = vector.shape_cast %10 : vector<128xf32> to vector<1x128xf32>
    %12 = arith.addf %7, %11 : vector<1x128xf32>
    %c0_i32_15 = arith.constant 0 : i32
    %c16_i32_16 = arith.constant 16 : i32
    %13 = arith.addi %c0_i32_15, %c16_i32_16 : i32
    %c1_i32_17 = arith.constant 1 : i32
    scf.for %arg10 = %c0_i32_15 to %13 step %c1_i32_17  : i32 {
      %c1_i32_126 = arith.constant 1 : i32
      %113 = arith.muli %arg10, %c1_i32_126 : i32
      %c0_i32_127 = arith.constant 0 : i32
      %114 = arith.addi %c0_i32_127, %113 : i32
      %c1_i32_128 = arith.constant 1 : i32
      %c1_i32_129 = arith.constant 1 : i32
      %c0_i32_130 = arith.constant 0 : i32
      %c0_i32_131 = arith.constant 0 : i32
      %115 = tpu.memref_slice %arg2[%c0_i32_130, %c0_i32_131] : memref<512x128xf32, #tpu.memory_space<any>> -> memref<1x128xf32, #tpu.memory_space<any>>
      %c0_i32_132 = arith.constant 0 : i32
      %116 = tpu.memref_slice %arg8[%c1_i32_128, %114, %c0_i32_132] : memref<2x16x128xf32, #tpu.memory_space<vmem>> -> memref<1x1x128xf32, #tpu.memory_space<vmem>>
      %117 = tpu.memref_squeeze %116 : memref<1x1x128xf32, #tpu.memory_space<vmem>> -> memref<1x128xf32, #tpu.memory_space<vmem>>
      %118 = tpu.memref_slice %arg9[%c1_i32_129, %114] : memref<2x16x!tpu.dma_semaphore, #tpu.memory_space<semaphore_mem>> -> memref<1x1x!tpu.dma_semaphore, #tpu.memory_space<semaphore_mem>>
      %119 = tpu.memref_squeeze %118 : memref<1x1x!tpu.dma_semaphore, #tpu.memory_space<semaphore_mem>> -> memref<!tpu.dma_semaphore, #tpu.memory_space<semaphore_mem>>
      tpu.wait_dma2 semaphore(%119 : memref<!tpu.dma_semaphore, #tpu.memory_space<semaphore_mem>>) src(%115 : memref<1x128xf32, #tpu.memory_space<any>>) dst(%117 : memref<1x128xf32, #tpu.memory_space<vmem>>)
    }
    %c16_i32_18 = arith.constant 16 : i32
    %c8_i32_19 = arith.constant 8 : i32
    %14 = arith.muli %arg0, %c8_i32_19 : i32
    %c2_i32 = arith.constant 2 : i32
    %15 = arith.addi %14, %c2_i32 : i32
    %c0_i32_20 = arith.constant 0 : i32
    %c16_i32_21 = arith.constant 16 : i32
    %16 = arith.addi %c0_i32_20, %c16_i32_21 : i32
    %c1_i32_22 = arith.constant 1 : i32
    scf.for %arg10 = %c0_i32_20 to %16 step %c1_i32_22  : i32 {
      %c1_i32_126 = arith.constant 1 : i32
      %113 = arith.muli %arg10, %c1_i32_126 : i32
      %c0_i32_127 = arith.constant 0 : i32
      %114 = arith.addi %c0_i32_127, %113 : i32
      %115 = arith.index_cast %15 : i32 to index
      %116 = arith.index_cast %114 : i32 to index
      %117 = memref.load %arg1[%115, %116] : memref<16x16xi32, #tpu.memory_space<smem>>
      %c0_i32_128 = arith.constant 0 : i32
      %c0_i32_129 = arith.constant 0 : i32
      %c0_i32_130 = arith.constant 0 : i32
      %118 = tpu.memref_slice %arg2[%117, %c0_i32_130] : memref<512x128xf32, #tpu.memory_space<any>> -> memref<1x128xf32, #tpu.memory_space<any>>
      %c0_i32_131 = arith.constant 0 : i32
      %119 = tpu.memref_slice %arg8[%c0_i32_128, %114, %c0_i32_131] : memref<2x16x128xf32, #tpu.memory_space<vmem>> -> memref<1x1x128xf32, #tpu.memory_space<vmem>>
      %120 = tpu.memref_squeeze %119 : memref<1x1x128xf32, #tpu.memory_space<vmem>> -> memref<1x128xf32, #tpu.memory_space<vmem>>
      %121 = tpu.memref_slice %arg9[%c0_i32_129, %114] : memref<2x16x!tpu.dma_semaphore, #tpu.memory_space<semaphore_mem>> -> memref<1x1x!tpu.dma_semaphore, #tpu.memory_space<semaphore_mem>>
      %122 = tpu.memref_squeeze %121 : memref<1x1x!tpu.dma_semaphore, #tpu.memory_space<semaphore_mem>> -> memref<!tpu.dma_semaphore, #tpu.memory_space<semaphore_mem>>
      tpu.enqueue_dma source(%118 : memref<1x128xf32, #tpu.memory_space<any>>) target(%120 : memref<1x128xf32, #tpu.memory_space<vmem>>) target_semaphore(%122 : memref<!tpu.dma_semaphore, #tpu.memory_space<semaphore_mem>>)
    }
    %c16_i32_23 = arith.constant 16 : i32
    %cst_24 = arith.constant 0.000000e+00 : f32
    %17 = vector.broadcast %cst_24 : f32 to vector<1x128xf32>
    %c1 = arith.constant 1 : index
    %c0_25 = arith.constant 0 : index
    %c0_26 = arith.constant 0 : index
    %18 = vector.load %arg8[%c1, %c0_25, %c0_26] : memref<2x16x128xf32, #tpu.memory_space<vmem>>, vector<1x16x128xf32>
    %19 = vector.shape_cast %18 : vector<1x16x128xf32> to vector<16x128xf32>
    %cst_27 = arith.constant dense<0.000000e+00> : vector<128xf32>
    %20 = vector.multi_reduction <add>, %19, %cst_27 [0] : vector<16x128xf32> to vector<128xf32>
    %21 = vector.shape_cast %20 : vector<128xf32> to vector<1x128xf32>
    %22 = arith.addf %17, %21 : vector<1x128xf32>
    %c0_i32_28 = arith.constant 0 : i32
    %c16_i32_29 = arith.constant 16 : i32
    %23 = arith.addi %c0_i32_28, %c16_i32_29 : i32
    %c1_i32_30 = arith.constant 1 : i32
    scf.for %arg10 = %c0_i32_28 to %23 step %c1_i32_30  : i32 {
      %c1_i32_126 = arith.constant 1 : i32
      %113 = arith.muli %arg10, %c1_i32_126 : i32
      %c0_i32_127 = arith.constant 0 : i32
      %114 = arith.addi %c0_i32_127, %113 : i32
      %c0_i32_128 = arith.constant 0 : i32
      %c0_i32_129 = arith.constant 0 : i32
      %c0_i32_130 = arith.constant 0 : i32
      %c0_i32_131 = arith.constant 0 : i32
      %115 = tpu.memref_slice %arg2[%c0_i32_130, %c0_i32_131] : memref<512x128xf32, #tpu.memory_space<any>> -> memref<1x128xf32, #tpu.memory_space<any>>
      %c0_i32_132 = arith.constant 0 : i32
      %116 = tpu.memref_slice %arg8[%c0_i32_128, %114, %c0_i32_132] : memref<2x16x128xf32, #tpu.memory_space<vmem>> -> memref<1x1x128xf32, #tpu.memory_space<vmem>>
      %117 = tpu.memref_squeeze %116 : memref<1x1x128xf32, #tpu.memory_space<vmem>> -> memref<1x128xf32, #tpu.memory_space<vmem>>
      %118 = tpu.memref_slice %arg9[%c0_i32_129, %114] : memref<2x16x!tpu.dma_semaphore, #tpu.memory_space<semaphore_mem>> -> memref<1x1x!tpu.dma_semaphore, #tpu.memory_space<semaphore_mem>>
      %119 = tpu.memref_squeeze %118 : memref<1x1x!tpu.dma_semaphore, #tpu.memory_space<semaphore_mem>> -> memref<!tpu.dma_semaphore, #tpu.memory_space<semaphore_mem>>
      tpu.wait_dma2 semaphore(%119 : memref<!tpu.dma_semaphore, #tpu.memory_space<semaphore_mem>>) src(%115 : memref<1x128xf32, #tpu.memory_space<any>>) dst(%117 : memref<1x128xf32, #tpu.memory_space<vmem>>)
    }
    %c16_i32_31 = arith.constant 16 : i32
    %c8_i32_32 = arith.constant 8 : i32
    %24 = arith.muli %arg0, %c8_i32_32 : i32
    %c3_i32 = arith.constant 3 : i32
    %25 = arith.addi %24, %c3_i32 : i32
    %c0_i32_33 = arith.constant 0 : i32
    %c16_i32_34 = arith.constant 16 : i32
    %26 = arith.addi %c0_i32_33, %c16_i32_34 : i32
    %c1_i32_35 = arith.constant 1 : i32
    scf.for %arg10 = %c0_i32_33 to %26 step %c1_i32_35  : i32 {
      %c1_i32_126 = arith.constant 1 : i32
      %113 = arith.muli %arg10, %c1_i32_126 : i32
      %c0_i32_127 = arith.constant 0 : i32
      %114 = arith.addi %c0_i32_127, %113 : i32
      %115 = arith.index_cast %25 : i32 to index
      %116 = arith.index_cast %114 : i32 to index
      %117 = memref.load %arg1[%115, %116] : memref<16x16xi32, #tpu.memory_space<smem>>
      %c1_i32_128 = arith.constant 1 : i32
      %c1_i32_129 = arith.constant 1 : i32
      %c0_i32_130 = arith.constant 0 : i32
      %118 = tpu.memref_slice %arg2[%117, %c0_i32_130] : memref<512x128xf32, #tpu.memory_space<any>> -> memref<1x128xf32, #tpu.memory_space<any>>
      %c0_i32_131 = arith.constant 0 : i32
      %119 = tpu.memref_slice %arg8[%c1_i32_128, %114, %c0_i32_131] : memref<2x16x128xf32, #tpu.memory_space<vmem>> -> memref<1x1x128xf32, #tpu.memory_space<vmem>>
      %120 = tpu.memref_squeeze %119 : memref<1x1x128xf32, #tpu.memory_space<vmem>> -> memref<1x128xf32, #tpu.memory_space<vmem>>
      %121 = tpu.memref_slice %arg9[%c1_i32_129, %114] : memref<2x16x!tpu.dma_semaphore, #tpu.memory_space<semaphore_mem>> -> memref<1x1x!tpu.dma_semaphore, #tpu.memory_space<semaphore_mem>>
      %122 = tpu.memref_squeeze %121 : memref<1x1x!tpu.dma_semaphore, #tpu.memory_space<semaphore_mem>> -> memref<!tpu.dma_semaphore, #tpu.memory_space<semaphore_mem>>
      tpu.enqueue_dma source(%118 : memref<1x128xf32, #tpu.memory_space<any>>) target(%120 : memref<1x128xf32, #tpu.memory_space<vmem>>) target_semaphore(%122 : memref<!tpu.dma_semaphore, #tpu.memory_space<semaphore_mem>>)
    }
    %c16_i32_36 = arith.constant 16 : i32
    %cst_37 = arith.constant 0.000000e+00 : f32
    %27 = vector.broadcast %cst_37 : f32 to vector<1x128xf32>
    %c0_38 = arith.constant 0 : index
    %c0_39 = arith.constant 0 : index
    %c0_40 = arith.constant 0 : index
    %28 = vector.load %arg8[%c0_38, %c0_39, %c0_40] : memref<2x16x128xf32, #tpu.memory_space<vmem>>, vector<1x16x128xf32>
    %29 = vector.shape_cast %28 : vector<1x16x128xf32> to vector<16x128xf32>
    %cst_41 = arith.constant dense<0.000000e+00> : vector<128xf32>
    %30 = vector.multi_reduction <add>, %29, %cst_41 [0] : vector<16x128xf32> to vector<128xf32>
    %31 = vector.shape_cast %30 : vector<128xf32> to vector<1x128xf32>
    %32 = arith.addf %27, %31 : vector<1x128xf32>
    %c0_i32_42 = arith.constant 0 : i32
    %c16_i32_43 = arith.constant 16 : i32
    %33 = arith.addi %c0_i32_42, %c16_i32_43 : i32
    %c1_i32_44 = arith.constant 1 : i32
    scf.for %arg10 = %c0_i32_42 to %33 step %c1_i32_44  : i32 {
      %c1_i32_126 = arith.constant 1 : i32
      %113 = arith.muli %arg10, %c1_i32_126 : i32
      %c0_i32_127 = arith.constant 0 : i32
      %114 = arith.addi %c0_i32_127, %113 : i32
      %c1_i32_128 = arith.constant 1 : i32
      %c1_i32_129 = arith.constant 1 : i32
      %c0_i32_130 = arith.constant 0 : i32
      %c0_i32_131 = arith.constant 0 : i32
      %115 = tpu.memref_slice %arg2[%c0_i32_130, %c0_i32_131] : memref<512x128xf32, #tpu.memory_space<any>> -> memref<1x128xf32, #tpu.memory_space<any>>
      %c0_i32_132 = arith.constant 0 : i32
      %116 = tpu.memref_slice %arg8[%c1_i32_128, %114, %c0_i32_132] : memref<2x16x128xf32, #tpu.memory_space<vmem>> -> memref<1x1x128xf32, #tpu.memory_space<vmem>>
      %117 = tpu.memref_squeeze %116 : memref<1x1x128xf32, #tpu.memory_space<vmem>> -> memref<1x128xf32, #tpu.memory_space<vmem>>
      %118 = tpu.memref_slice %arg9[%c1_i32_129, %114] : memref<2x16x!tpu.dma_semaphore, #tpu.memory_space<semaphore_mem>> -> memref<1x1x!tpu.dma_semaphore, #tpu.memory_space<semaphore_mem>>
      %119 = tpu.memref_squeeze %118 : memref<1x1x!tpu.dma_semaphore, #tpu.memory_space<semaphore_mem>> -> memref<!tpu.dma_semaphore, #tpu.memory_space<semaphore_mem>>
      tpu.wait_dma2 semaphore(%119 : memref<!tpu.dma_semaphore, #tpu.memory_space<semaphore_mem>>) src(%115 : memref<1x128xf32, #tpu.memory_space<any>>) dst(%117 : memref<1x128xf32, #tpu.memory_space<vmem>>)
    }
    %c16_i32_45 = arith.constant 16 : i32
    %c8_i32_46 = arith.constant 8 : i32
    %34 = arith.muli %arg0, %c8_i32_46 : i32
    %c4_i32 = arith.constant 4 : i32
    %35 = arith.addi %34, %c4_i32 : i32
    %c0_i32_47 = arith.constant 0 : i32
    %c16_i32_48 = arith.constant 16 : i32
    %36 = arith.addi %c0_i32_47, %c16_i32_48 : i32
    %c1_i32_49 = arith.constant 1 : i32
    scf.for %arg10 = %c0_i32_47 to %36 step %c1_i32_49  : i32 {
      %c1_i32_126 = arith.constant 1 : i32
      %113 = arith.muli %arg10, %c1_i32_126 : i32
      %c0_i32_127 = arith.constant 0 : i32
      %114 = arith.addi %c0_i32_127, %113 : i32
      %115 = arith.index_cast %35 : i32 to index
      %116 = arith.index_cast %114 : i32 to index
      %117 = memref.load %arg1[%115, %116] : memref<16x16xi32, #tpu.memory_space<smem>>
      %c0_i32_128 = arith.constant 0 : i32
      %c0_i32_129 = arith.constant 0 : i32
      %c0_i32_130 = arith.constant 0 : i32
      %118 = tpu.memref_slice %arg2[%117, %c0_i32_130] : memref<512x128xf32, #tpu.memory_space<any>> -> memref<1x128xf32, #tpu.memory_space<any>>
      %c0_i32_131 = arith.constant 0 : i32
      %119 = tpu.memref_slice %arg8[%c0_i32_128, %114, %c0_i32_131] : memref<2x16x128xf32, #tpu.memory_space<vmem>> -> memref<1x1x128xf32, #tpu.memory_space<vmem>>
      %120 = tpu.memref_squeeze %119 : memref<1x1x128xf32, #tpu.memory_space<vmem>> -> memref<1x128xf32, #tpu.memory_space<vmem>>
      %121 = tpu.memref_slice %arg9[%c0_i32_129, %114] : memref<2x16x!tpu.dma_semaphore, #tpu.memory_space<semaphore_mem>> -> memref<1x1x!tpu.dma_semaphore, #tpu.memory_space<semaphore_mem>>
      %122 = tpu.memref_squeeze %121 : memref<1x1x!tpu.dma_semaphore, #tpu.memory_space<semaphore_mem>> -> memref<!tpu.dma_semaphore, #tpu.memory_space<semaphore_mem>>
      tpu.enqueue_dma source(%118 : memref<1x128xf32, #tpu.memory_space<any>>) target(%120 : memref<1x128xf32, #tpu.memory_space<vmem>>) target_semaphore(%122 : memref<!tpu.dma_semaphore, #tpu.memory_space<semaphore_mem>>)
    }
    %c16_i32_50 = arith.constant 16 : i32
    %cst_51 = arith.constant 0.000000e+00 : f32
    %37 = vector.broadcast %cst_51 : f32 to vector<1x128xf32>
    %c1_52 = arith.constant 1 : index
    %c0_53 = arith.constant 0 : index
    %c0_54 = arith.constant 0 : index
    %38 = vector.load %arg8[%c1_52, %c0_53, %c0_54] : memref<2x16x128xf32, #tpu.memory_space<vmem>>, vector<1x16x128xf32>
    %39 = vector.shape_cast %38 : vector<1x16x128xf32> to vector<16x128xf32>
    %cst_55 = arith.constant dense<0.000000e+00> : vector<128xf32>
    %40 = vector.multi_reduction <add>, %39, %cst_55 [0] : vector<16x128xf32> to vector<128xf32>
    %41 = vector.shape_cast %40 : vector<128xf32> to vector<1x128xf32>
    %42 = arith.addf %37, %41 : vector<1x128xf32>
    %c0_i32_56 = arith.constant 0 : i32
    %c16_i32_57 = arith.constant 16 : i32
    %43 = arith.addi %c0_i32_56, %c16_i32_57 : i32
    %c1_i32_58 = arith.constant 1 : i32
    scf.for %arg10 = %c0_i32_56 to %43 step %c1_i32_58  : i32 {
      %c1_i32_126 = arith.constant 1 : i32
      %113 = arith.muli %arg10, %c1_i32_126 : i32
      %c0_i32_127 = arith.constant 0 : i32
      %114 = arith.addi %c0_i32_127, %113 : i32
      %c0_i32_128 = arith.constant 0 : i32
      %c0_i32_129 = arith.constant 0 : i32
      %c0_i32_130 = arith.constant 0 : i32
      %c0_i32_131 = arith.constant 0 : i32
      %115 = tpu.memref_slice %arg2[%c0_i32_130, %c0_i32_131] : memref<512x128xf32, #tpu.memory_space<any>> -> memref<1x128xf32, #tpu.memory_space<any>>
      %c0_i32_132 = arith.constant 0 : i32
      %116 = tpu.memref_slice %arg8[%c0_i32_128, %114, %c0_i32_132] : memref<2x16x128xf32, #tpu.memory_space<vmem>> -> memref<1x1x128xf32, #tpu.memory_space<vmem>>
      %117 = tpu.memref_squeeze %116 : memref<1x1x128xf32, #tpu.memory_space<vmem>> -> memref<1x128xf32, #tpu.memory_space<vmem>>
      %118 = tpu.memref_slice %arg9[%c0_i32_129, %114] : memref<2x16x!tpu.dma_semaphore, #tpu.memory_space<semaphore_mem>> -> memref<1x1x!tpu.dma_semaphore, #tpu.memory_space<semaphore_mem>>
      %119 = tpu.memref_squeeze %118 : memref<1x1x!tpu.dma_semaphore, #tpu.memory_space<semaphore_mem>> -> memref<!tpu.dma_semaphore, #tpu.memory_space<semaphore_mem>>
      tpu.wait_dma2 semaphore(%119 : memref<!tpu.dma_semaphore, #tpu.memory_space<semaphore_mem>>) src(%115 : memref<1x128xf32, #tpu.memory_space<any>>) dst(%117 : memref<1x128xf32, #tpu.memory_space<vmem>>)
    }
    %c16_i32_59 = arith.constant 16 : i32
    %c8_i32_60 = arith.constant 8 : i32
    %44 = arith.muli %arg0, %c8_i32_60 : i32
    %c5_i32 = arith.constant 5 : i32
    %45 = arith.addi %44, %c5_i32 : i32
    %c0_i32_61 = arith.constant 0 : i32
    %c16_i32_62 = arith.constant 16 : i32
    %46 = arith.addi %c0_i32_61, %c16_i32_62 : i32
    %c1_i32_63 = arith.constant 1 : i32
    scf.for %arg10 = %c0_i32_61 to %46 step %c1_i32_63  : i32 {
      %c1_i32_126 = arith.constant 1 : i32
      %113 = arith.muli %arg10, %c1_i32_126 : i32
      %c0_i32_127 = arith.constant 0 : i32
      %114 = arith.addi %c0_i32_127, %113 : i32
      %115 = arith.index_cast %45 : i32 to index
      %116 = arith.index_cast %114 : i32 to index
      %117 = memref.load %arg1[%115, %116] : memref<16x16xi32, #tpu.memory_space<smem>>
      %c1_i32_128 = arith.constant 1 : i32
      %c1_i32_129 = arith.constant 1 : i32
      %c0_i32_130 = arith.constant 0 : i32
      %118 = tpu.memref_slice %arg2[%117, %c0_i32_130] : memref<512x128xf32, #tpu.memory_space<any>> -> memref<1x128xf32, #tpu.memory_space<any>>
      %c0_i32_131 = arith.constant 0 : i32
      %119 = tpu.memref_slice %arg8[%c1_i32_128, %114, %c0_i32_131] : memref<2x16x128xf32, #tpu.memory_space<vmem>> -> memref<1x1x128xf32, #tpu.memory_space<vmem>>
      %120 = tpu.memref_squeeze %119 : memref<1x1x128xf32, #tpu.memory_space<vmem>> -> memref<1x128xf32, #tpu.memory_space<vmem>>
      %121 = tpu.memref_slice %arg9[%c1_i32_129, %114] : memref<2x16x!tpu.dma_semaphore, #tpu.memory_space<semaphore_mem>> -> memref<1x1x!tpu.dma_semaphore, #tpu.memory_space<semaphore_mem>>
      %122 = tpu.memref_squeeze %121 : memref<1x1x!tpu.dma_semaphore, #tpu.memory_space<semaphore_mem>> -> memref<!tpu.dma_semaphore, #tpu.memory_space<semaphore_mem>>
      tpu.enqueue_dma source(%118 : memref<1x128xf32, #tpu.memory_space<any>>) target(%120 : memref<1x128xf32, #tpu.memory_space<vmem>>) target_semaphore(%122 : memref<!tpu.dma_semaphore, #tpu.memory_space<semaphore_mem>>)
    }
    %c16_i32_64 = arith.constant 16 : i32
    %cst_65 = arith.constant 0.000000e+00 : f32
    %47 = vector.broadcast %cst_65 : f32 to vector<1x128xf32>
    %c0_66 = arith.constant 0 : index
    %c0_67 = arith.constant 0 : index
    %c0_68 = arith.constant 0 : index
    %48 = vector.load %arg8[%c0_66, %c0_67, %c0_68] : memref<2x16x128xf32, #tpu.memory_space<vmem>>, vector<1x16x128xf32>
    %49 = vector.shape_cast %48 : vector<1x16x128xf32> to vector<16x128xf32>
    %cst_69 = arith.constant dense<0.000000e+00> : vector<128xf32>
    %50 = vector.multi_reduction <add>, %49, %cst_69 [0] : vector<16x128xf32> to vector<128xf32>
    %51 = vector.shape_cast %50 : vector<128xf32> to vector<1x128xf32>
    %52 = arith.addf %47, %51 : vector<1x128xf32>
    %c0_i32_70 = arith.constant 0 : i32
    %c16_i32_71 = arith.constant 16 : i32
    %53 = arith.addi %c0_i32_70, %c16_i32_71 : i32
    %c1_i32_72 = arith.constant 1 : i32
    scf.for %arg10 = %c0_i32_70 to %53 step %c1_i32_72  : i32 {
      %c1_i32_126 = arith.constant 1 : i32
      %113 = arith.muli %arg10, %c1_i32_126 : i32
      %c0_i32_127 = arith.constant 0 : i32
      %114 = arith.addi %c0_i32_127, %113 : i32
      %c1_i32_128 = arith.constant 1 : i32
      %c1_i32_129 = arith.constant 1 : i32
      %c0_i32_130 = arith.constant 0 : i32
      %c0_i32_131 = arith.constant 0 : i32
      %115 = tpu.memref_slice %arg2[%c0_i32_130, %c0_i32_131] : memref<512x128xf32, #tpu.memory_space<any>> -> memref<1x128xf32, #tpu.memory_space<any>>
      %c0_i32_132 = arith.constant 0 : i32
      %116 = tpu.memref_slice %arg8[%c1_i32_128, %114, %c0_i32_132] : memref<2x16x128xf32, #tpu.memory_space<vmem>> -> memref<1x1x128xf32, #tpu.memory_space<vmem>>
      %117 = tpu.memref_squeeze %116 : memref<1x1x128xf32, #tpu.memory_space<vmem>> -> memref<1x128xf32, #tpu.memory_space<vmem>>
      %118 = tpu.memref_slice %arg9[%c1_i32_129, %114] : memref<2x16x!tpu.dma_semaphore, #tpu.memory_space<semaphore_mem>> -> memref<1x1x!tpu.dma_semaphore, #tpu.memory_space<semaphore_mem>>
      %119 = tpu.memref_squeeze %118 : memref<1x1x!tpu.dma_semaphore, #tpu.memory_space<semaphore_mem>> -> memref<!tpu.dma_semaphore, #tpu.memory_space<semaphore_mem>>
      tpu.wait_dma2 semaphore(%119 : memref<!tpu.dma_semaphore, #tpu.memory_space<semaphore_mem>>) src(%115 : memref<1x128xf32, #tpu.memory_space<any>>) dst(%117 : memref<1x128xf32, #tpu.memory_space<vmem>>)
    }
    %c16_i32_73 = arith.constant 16 : i32
    %c8_i32_74 = arith.constant 8 : i32
    %54 = arith.muli %arg0, %c8_i32_74 : i32
    %c6_i32 = arith.constant 6 : i32
    %55 = arith.addi %54, %c6_i32 : i32
    %c0_i32_75 = arith.constant 0 : i32
    %c16_i32_76 = arith.constant 16 : i32
    %56 = arith.addi %c0_i32_75, %c16_i32_76 : i32
    %c1_i32_77 = arith.constant 1 : i32
    scf.for %arg10 = %c0_i32_75 to %56 step %c1_i32_77  : i32 {
      %c1_i32_126 = arith.constant 1 : i32
      %113 = arith.muli %arg10, %c1_i32_126 : i32
      %c0_i32_127 = arith.constant 0 : i32
      %114 = arith.addi %c0_i32_127, %113 : i32
      %115 = arith.index_cast %55 : i32 to index
      %116 = arith.index_cast %114 : i32 to index
      %117 = memref.load %arg1[%115, %116] : memref<16x16xi32, #tpu.memory_space<smem>>
      %c0_i32_128 = arith.constant 0 : i32
      %c0_i32_129 = arith.constant 0 : i32
      %c0_i32_130 = arith.constant 0 : i32
      %118 = tpu.memref_slice %arg2[%117, %c0_i32_130] : memref<512x128xf32, #tpu.memory_space<any>> -> memref<1x128xf32, #tpu.memory_space<any>>
      %c0_i32_131 = arith.constant 0 : i32
      %119 = tpu.memref_slice %arg8[%c0_i32_128, %114, %c0_i32_131] : memref<2x16x128xf32, #tpu.memory_space<vmem>> -> memref<1x1x128xf32, #tpu.memory_space<vmem>>
      %120 = tpu.memref_squeeze %119 : memref<1x1x128xf32, #tpu.memory_space<vmem>> -> memref<1x128xf32, #tpu.memory_space<vmem>>
      %121 = tpu.memref_slice %arg9[%c0_i32_129, %114] : memref<2x16x!tpu.dma_semaphore, #tpu.memory_space<semaphore_mem>> -> memref<1x1x!tpu.dma_semaphore, #tpu.memory_space<semaphore_mem>>
      %122 = tpu.memref_squeeze %121 : memref<1x1x!tpu.dma_semaphore, #tpu.memory_space<semaphore_mem>> -> memref<!tpu.dma_semaphore, #tpu.memory_space<semaphore_mem>>
      tpu.enqueue_dma source(%118 : memref<1x128xf32, #tpu.memory_space<any>>) target(%120 : memref<1x128xf32, #tpu.memory_space<vmem>>) target_semaphore(%122 : memref<!tpu.dma_semaphore, #tpu.memory_space<semaphore_mem>>)
    }
    %c16_i32_78 = arith.constant 16 : i32
    %cst_79 = arith.constant 0.000000e+00 : f32
    %57 = vector.broadcast %cst_79 : f32 to vector<1x128xf32>
    %c1_80 = arith.constant 1 : index
    %c0_81 = arith.constant 0 : index
    %c0_82 = arith.constant 0 : index
    %58 = vector.load %arg8[%c1_80, %c0_81, %c0_82] : memref<2x16x128xf32, #tpu.memory_space<vmem>>, vector<1x16x128xf32>
    %59 = vector.shape_cast %58 : vector<1x16x128xf32> to vector<16x128xf32>
    %cst_83 = arith.constant dense<0.000000e+00> : vector<128xf32>
    %60 = vector.multi_reduction <add>, %59, %cst_83 [0] : vector<16x128xf32> to vector<128xf32>
    %61 = vector.shape_cast %60 : vector<128xf32> to vector<1x128xf32>
    %62 = arith.addf %57, %61 : vector<1x128xf32>
    %c0_i32_84 = arith.constant 0 : i32
    %c16_i32_85 = arith.constant 16 : i32
    %63 = arith.addi %c0_i32_84, %c16_i32_85 : i32
    %c1_i32_86 = arith.constant 1 : i32
    scf.for %arg10 = %c0_i32_84 to %63 step %c1_i32_86  : i32 {
      %c1_i32_126 = arith.constant 1 : i32
      %113 = arith.muli %arg10, %c1_i32_126 : i32
      %c0_i32_127 = arith.constant 0 : i32
      %114 = arith.addi %c0_i32_127, %113 : i32
      %c0_i32_128 = arith.constant 0 : i32
      %c0_i32_129 = arith.constant 0 : i32
      %c0_i32_130 = arith.constant 0 : i32
      %c0_i32_131 = arith.constant 0 : i32
      %115 = tpu.memref_slice %arg2[%c0_i32_130, %c0_i32_131] : memref<512x128xf32, #tpu.memory_space<any>> -> memref<1x128xf32, #tpu.memory_space<any>>
      %c0_i32_132 = arith.constant 0 : i32
      %116 = tpu.memref_slice %arg8[%c0_i32_128, %114, %c0_i32_132] : memref<2x16x128xf32, #tpu.memory_space<vmem>> -> memref<1x1x128xf32, #tpu.memory_space<vmem>>
      %117 = tpu.memref_squeeze %116 : memref<1x1x128xf32, #tpu.memory_space<vmem>> -> memref<1x128xf32, #tpu.memory_space<vmem>>
      %118 = tpu.memref_slice %arg9[%c0_i32_129, %114] : memref<2x16x!tpu.dma_semaphore, #tpu.memory_space<semaphore_mem>> -> memref<1x1x!tpu.dma_semaphore, #tpu.memory_space<semaphore_mem>>
      %119 = tpu.memref_squeeze %118 : memref<1x1x!tpu.dma_semaphore, #tpu.memory_space<semaphore_mem>> -> memref<!tpu.dma_semaphore, #tpu.memory_space<semaphore_mem>>
      tpu.wait_dma2 semaphore(%119 : memref<!tpu.dma_semaphore, #tpu.memory_space<semaphore_mem>>) src(%115 : memref<1x128xf32, #tpu.memory_space<any>>) dst(%117 : memref<1x128xf32, #tpu.memory_space<vmem>>)
    }
    %c16_i32_87 = arith.constant 16 : i32
    %c8_i32_88 = arith.constant 8 : i32
    %64 = arith.muli %arg0, %c8_i32_88 : i32
    %c7_i32 = arith.constant 7 : i32
    %65 = arith.addi %64, %c7_i32 : i32
    %c0_i32_89 = arith.constant 0 : i32
    %c16_i32_90 = arith.constant 16 : i32
    %66 = arith.addi %c0_i32_89, %c16_i32_90 : i32
    %c1_i32_91 = arith.constant 1 : i32
    scf.for %arg10 = %c0_i32_89 to %66 step %c1_i32_91  : i32 {
      %c1_i32_126 = arith.constant 1 : i32
      %113 = arith.muli %arg10, %c1_i32_126 : i32
      %c0_i32_127 = arith.constant 0 : i32
      %114 = arith.addi %c0_i32_127, %113 : i32
      %115 = arith.index_cast %65 : i32 to index
      %116 = arith.index_cast %114 : i32 to index
      %117 = memref.load %arg1[%115, %116] : memref<16x16xi32, #tpu.memory_space<smem>>
      %c1_i32_128 = arith.constant 1 : i32
      %c1_i32_129 = arith.constant 1 : i32
      %c0_i32_130 = arith.constant 0 : i32
      %118 = tpu.memref_slice %arg2[%117, %c0_i32_130] : memref<512x128xf32, #tpu.memory_space<any>> -> memref<1x128xf32, #tpu.memory_space<any>>
      %c0_i32_131 = arith.constant 0 : i32
      %119 = tpu.memref_slice %arg8[%c1_i32_128, %114, %c0_i32_131] : memref<2x16x128xf32, #tpu.memory_space<vmem>> -> memref<1x1x128xf32, #tpu.memory_space<vmem>>
      %120 = tpu.memref_squeeze %119 : memref<1x1x128xf32, #tpu.memory_space<vmem>> -> memref<1x128xf32, #tpu.memory_space<vmem>>
      %121 = tpu.memref_slice %arg9[%c1_i32_129, %114] : memref<2x16x!tpu.dma_semaphore, #tpu.memory_space<semaphore_mem>> -> memref<1x1x!tpu.dma_semaphore, #tpu.memory_space<semaphore_mem>>
      %122 = tpu.memref_squeeze %121 : memref<1x1x!tpu.dma_semaphore, #tpu.memory_space<semaphore_mem>> -> memref<!tpu.dma_semaphore, #tpu.memory_space<semaphore_mem>>
      tpu.enqueue_dma source(%118 : memref<1x128xf32, #tpu.memory_space<any>>) target(%120 : memref<1x128xf32, #tpu.memory_space<vmem>>) target_semaphore(%122 : memref<!tpu.dma_semaphore, #tpu.memory_space<semaphore_mem>>)
    }
    %c16_i32_92 = arith.constant 16 : i32
    %cst_93 = arith.constant 0.000000e+00 : f32
    %67 = vector.broadcast %cst_93 : f32 to vector<1x128xf32>
    %c0_94 = arith.constant 0 : index
    %c0_95 = arith.constant 0 : index
    %c0_96 = arith.constant 0 : index
    %68 = vector.load %arg8[%c0_94, %c0_95, %c0_96] : memref<2x16x128xf32, #tpu.memory_space<vmem>>, vector<1x16x128xf32>
    %69 = vector.shape_cast %68 : vector<1x16x128xf32> to vector<16x128xf32>
    %cst_97 = arith.constant dense<0.000000e+00> : vector<128xf32>
    %70 = vector.multi_reduction <add>, %69, %cst_97 [0] : vector<16x128xf32> to vector<128xf32>
    %71 = vector.shape_cast %70 : vector<128xf32> to vector<1x128xf32>
    %72 = arith.addf %67, %71 : vector<1x128xf32>
    %c0_i32_98 = arith.constant 0 : i32
    %c16_i32_99 = arith.constant 16 : i32
    %73 = arith.addi %c0_i32_98, %c16_i32_99 : i32
    %c1_i32_100 = arith.constant 1 : i32
    scf.for %arg10 = %c0_i32_98 to %73 step %c1_i32_100  : i32 {
      %c1_i32_126 = arith.constant 1 : i32
      %113 = arith.muli %arg10, %c1_i32_126 : i32
      %c0_i32_127 = arith.constant 0 : i32
      %114 = arith.addi %c0_i32_127, %113 : i32
      %c1_i32_128 = arith.constant 1 : i32
      %c1_i32_129 = arith.constant 1 : i32
      %c0_i32_130 = arith.constant 0 : i32
      %c0_i32_131 = arith.constant 0 : i32
      %115 = tpu.memref_slice %arg2[%c0_i32_130, %c0_i32_131] : memref<512x128xf32, #tpu.memory_space<any>> -> memref<1x128xf32, #tpu.memory_space<any>>
      %c0_i32_132 = arith.constant 0 : i32
      %116 = tpu.memref_slice %arg8[%c1_i32_128, %114, %c0_i32_132] : memref<2x16x128xf32, #tpu.memory_space<vmem>> -> memref<1x1x128xf32, #tpu.memory_space<vmem>>
      %117 = tpu.memref_squeeze %116 : memref<1x1x128xf32, #tpu.memory_space<vmem>> -> memref<1x128xf32, #tpu.memory_space<vmem>>
      %118 = tpu.memref_slice %arg9[%c1_i32_129, %114] : memref<2x16x!tpu.dma_semaphore, #tpu.memory_space<semaphore_mem>> -> memref<1x1x!tpu.dma_semaphore, #tpu.memory_space<semaphore_mem>>
      %119 = tpu.memref_squeeze %118 : memref<1x1x!tpu.dma_semaphore, #tpu.memory_space<semaphore_mem>> -> memref<!tpu.dma_semaphore, #tpu.memory_space<semaphore_mem>>
      tpu.wait_dma2 semaphore(%119 : memref<!tpu.dma_semaphore, #tpu.memory_space<semaphore_mem>>) src(%115 : memref<1x128xf32, #tpu.memory_space<any>>) dst(%117 : memref<1x128xf32, #tpu.memory_space<vmem>>)
    }
    %c16_i32_101 = arith.constant 16 : i32
    %cst_102 = arith.constant 0.000000e+00 : f32
    %74 = vector.broadcast %cst_102 : f32 to vector<1x128xf32>
    %c1_103 = arith.constant 1 : index
    %c0_104 = arith.constant 0 : index
    %c0_105 = arith.constant 0 : index
    %75 = vector.load %arg8[%c1_103, %c0_104, %c0_105] : memref<2x16x128xf32, #tpu.memory_space<vmem>>, vector<1x16x128xf32>
    %76 = vector.shape_cast %75 : vector<1x16x128xf32> to vector<16x128xf32>
    %cst_106 = arith.constant dense<0.000000e+00> : vector<128xf32>
    %77 = vector.multi_reduction <add>, %76, %cst_106 [0] : vector<16x128xf32> to vector<128xf32>
    %78 = vector.shape_cast %77 : vector<128xf32> to vector<1x128xf32>
    %79 = arith.addf %74, %78 : vector<1x128xf32>
    %80 = tpu.concatenate %12, %22, %32, %42, %52, %62, %72, %79 in 0 : vector<1x128xf32>, vector<1x128xf32>, vector<1x128xf32>, vector<1x128xf32>, vector<1x128xf32>, vector<1x128xf32>, vector<1x128xf32>, vector<1x128xf32> -> vector<8x128xf32>
    %cst_107 = arith.constant 6.250000e-02 : f32
    %81 = vector.broadcast %cst_107 : f32 to vector<8x128xf32>
    %82 = arith.mulf %80, %81 : vector<8x128xf32>
    %c0_108 = arith.constant 0 : index
    %c0_109 = arith.constant 0 : index
    %83 = vector.load %arg3[%c0_108, %c0_109] : memref<128x128xf32, #tpu.memory_space<vmem>>, vector<128x128xf32>
    %cst_110 = arith.constant dense<0.000000e+00> : vector<8x128xf32>
    %84 = tpu.matmul %82, %83, %cst_110 {dimension_numbers = #tpu.dot_dimension_numbers<[1], [0], [0], [1], [0, 0, 1, 1], [], []>} : vector<8x128xf32>, vector<128x128xf32>, vector<8x128xf32> -> vector<8x128xf32>
    %c0_111 = arith.constant 0 : index
    %c0_112 = arith.constant 0 : index
    %85 = vector.load %arg4[%c0_111, %c0_112] : memref<1x128xf32, #tpu.memory_space<vmem>>, vector<1x128xf32>
    %86 = vector.broadcast %85 : vector<1x128xf32> to vector<8x128xf32>
    %87 = arith.addf %84, %86 : vector<8x128xf32>
    %cst_113 = arith.constant 0.000000e+00 : f32
    %88 = vector.broadcast %cst_113 : f32 to vector<8x128xf32>
    %89 = arith.maximumf %87, %88 : vector<8x128xf32>
    %c0_114 = arith.constant 0 : index
    %c0_115 = arith.constant 0 : index
    %90 = vector.load %arg5[%c0_114, %c0_115] : memref<128x128xf32, #tpu.memory_space<vmem>>, vector<128x128xf32>
    %cst_116 = arith.constant dense<0.000000e+00> : vector<8x128xf32>
    %91 = tpu.matmul %89, %90, %cst_116 {dimension_numbers = #tpu.dot_dimension_numbers<[1], [0], [0], [1], [0, 0, 1, 1], [], []>} : vector<8x128xf32>, vector<128x128xf32>, vector<8x128xf32> -> vector<8x128xf32>
    %c0_117 = arith.constant 0 : index
    %c0_118 = arith.constant 0 : index
    %92 = vector.load %arg6[%c0_117, %c0_118] : memref<1x128xf32, #tpu.memory_space<vmem>>, vector<1x128xf32>
    %93 = vector.broadcast %92 : vector<1x128xf32> to vector<8x128xf32>
    %94 = arith.addf %91, %93 : vector<8x128xf32>
    %cst_119 = arith.constant 0.000000e+00 : f32
    %95 = vector.broadcast %cst_119 : f32 to vector<8x128xf32>
    %96 = arith.maximumf %94, %95 : vector<8x128xf32>
    %97 = tpu.iota {dimensions = array<i32: 1>} : vector<8x128xi32>
    %c2_i32_120 = arith.constant 2 : i32
    %98 = vector.broadcast %c2_i32_120 : i32 to vector<8x128xi32>
    %99 = arith.cmpi slt, %97, %98 : vector<8x128xi32>
    %cst_121 = arith.constant 0xFF800000 : f32
    %100 = vector.broadcast %cst_121 : f32 to vector<8x128xf32>
    %101 = arith.select %99, %96, %100 : vector<8x128xi1>, vector<8x128xf32>
    %cst_122 = arith.constant dense<0xFF800000> : vector<8xf32>
    %102 = vector.multi_reduction <maximumf>, %101, %cst_122 [1] : vector<8x128xf32> to vector<8xf32>
    %103 = vector.shape_cast %102 : vector<8xf32> to vector<8x1xf32>
    %104 = vector.broadcast %103 : vector<8x1xf32> to vector<8x128xf32>
    %105 = arith.subf %101, %104 : vector<8x128xf32>
    %106 = math.exp %105 : vector<8x128xf32>
    %cst_123 = arith.constant dense<0.000000e+00> : vector<8xf32>
    %107 = vector.multi_reduction <add>, %106, %cst_123 [1] : vector<8x128xf32> to vector<8xf32>
    %108 = vector.shape_cast %107 : vector<8xf32> to vector<8x1xf32>
    %109 = math.log %108 : vector<8x1xf32>
    %110 = vector.broadcast %109 : vector<8x1xf32> to vector<8x128xf32>
    %111 = arith.subf %105, %110 : vector<8x128xf32>
    %c0_124 = arith.constant 0 : index
    %c0_125 = arith.constant 0 : index
    %112 = vector.load %arg7[%c0_124, %c0_125] : memref<8x128xf32, #tpu.memory_space<vmem>>, vector<8x128xf32>
    tpu.vector_store %arg7[%c0_124, %c0_125], %111 {strides = array<i32>} : memref<8x128xf32, #tpu.memory_space<vmem>>, vector<8x128xf32>,
    return
  }
  func.func @transform_1(%arg0: i32, %arg1: memref<16x16xi32, #tpu.memory_space<smem>>) -> (i32, i32) {
    %c0_i32 = arith.constant 0 : i32
    %c0_i32_0 = arith.constant 0 : i32
    %c0_i32_1 = arith.constant 0 : i32
    return %c0_i32, %c0_i32_0 : i32, i32
  }
  func.func @transform_2(%arg0: i32, %arg1: memref<16x16xi32, #tpu.memory_space<smem>>) -> (i32, i32) {
    %c0_i32 = arith.constant 0 : i32
    %c0_i32_0 = arith.constant 0 : i32
    %c0_i32_1 = arith.constant 0 : i32
    return %c0_i32, %c0_i32_0 : i32, i32
  }
  func.func @transform_3(%arg0: i32, %arg1: memref<16x16xi32, #tpu.memory_space<smem>>) -> (i32, i32) {
    %c0_i32 = arith.constant 0 : i32
    %c0_i32_0 = arith.constant 0 : i32
    %c0_i32_1 = arith.constant 0 : i32
    return %c0_i32, %c0_i32_0 : i32, i32
  }
  func.func @transform_4(%arg0: i32, %arg1: memref<16x16xi32, #tpu.memory_space<smem>>) -> (i32, i32) {
    %c0_i32 = arith.constant 0 : i32
    %c0_i32_0 = arith.constant 0 : i32
    %c0_i32_1 = arith.constant 0 : i32
    return %c0_i32, %c0_i32_0 : i32, i32
  }
  func.func @transform_5(%arg0: i32, %arg1: memref<16x16xi32, #tpu.memory_space<smem>>) -> (i32, i32) {
    %c0_i32 = arith.constant 0 : i32
    %c0_i32_0 = arith.constant 0 : i32
    return %arg0, %c0_i32 : i32, i32
  }
}

</mosaic_0001>

<bundles_post_ra>
// kernel: tpu_custom_call.1
= control target key start
LH: loop header
LB: loop body
LE: loop exit
PB: predicated region body
PF: predicated region fallthrough
CT: control target
= control target key end

     0   :  { %s2647_s0 = inlined_call_operand.hbm [shape: s32[16,16], index: 0, kind: input, shape index: {}]   ;;  %s2648_s1 = inlined_call_operand.hbm [shape: f32[512,128], index: 1, kind: input, shape index: {}]   ;;  %s2649_s2 = inlined_call_operand.hbm [shape: f32[128,128], index: 2, kind: input, shape index: {}]   ;;  %s2650_s3 = inlined_call_operand.vmem [shape: f32[1,128], index: 3, kind: input, shape index: {}]   ;;  %s2651_s4 = inlined_call_operand.hbm [shape: f32[128,128], index: 4, kind: input, shape index: {}]   ;;  %s2652_s5 = inlined_call_operand.vmem [shape: f32[1,128], index: 5, kind: input, shape index: {}]   ;;  %s2653_s6 = inlined_call_operand.hbm [shape: f32[16,128], index: 6, kind: output, shape index: {}]  }
   0x1   :  { %2665 = sst [smem:[#allocation48_spill]] %s2649_s2  ;;  %s1690_s23 = scalar_lea.hbm %s2647_s0, 256 }
   0x2   :  { %2666 = sst [smem:[#allocation49_spill]] %s2651_s4  ;;  %p1691_p0 = scmp.ne.s32.totalorder %s2647_s0, %s1690_s23 }
   0x3   :  { %2667 = sst [smem:[#allocation50_spill]] %s2653_s6  ;;  %p1694_p1 = scmp.lt.u32.totalorder %s1690_s23, %s2647_s0 }
   0x5   :  { %p1696_p2 = pnand %p1694_p1, %p1691_p0 }
   0x7   :  { %1699 = shalt.err (!%p1696_p2)  }
   0x8   :  { %s2166_s28 = smov [#allocation5]  }
   0x9   :  { %12 = dma.hbm_to_smem %s2647_s0, 256, %s2166_s28, [#allocation4] }
   0xa   :  { %2056 = dma.done.wait [#allocation4], 256 }
   0xb   :  { %2057 = vsyncadd [#allocation4], 4294967040 }
   0xc   :  { %14 = sfence }
   0xd   :  { %15 = vsyncpa [#allocation7], 0 }
   0xe   :  { %16 = vsyncpa [#allocation10], 0 }
   0xf   :  { %17 = vsyncpa [#allocation8], 0 }
  0x10   :  { %19 = vsyncpa [#allocation8 + $0x1], 0  ;;  %s2223_s7 = smov 0   ;;  %s2225_s8 = smov 0  }
  0x11   :  { %s2227_s9 = smov 0   ;;  %s2229_s10 = smov 0  }
  0x12 LB: > { %2668 = sst [smem:[#allocation42_spill]] %s2088_s7  ;;  %s2244_s0 = sadd.s32 4294967295, %s2100_s10   ;;  %s2100_s10 = sphi %s2229_s10, %s2694_s10   ;;  %s2096_s9 = sphi %s2227_s9, %s2696_s9   ;;  %s2092_s8 = sphi %s2225_s8, %s2698_s8   ;;  %s2088_s7 = sphi %s2223_s7, %s2697_s7  }
  0x13   : > { %2669 = sst [smem:[#allocation43_spill]] %s2096_s9  ;;  %s1277_s11 = sadd.s32 4294967294, %s2100_s10  }
  0x14   : > { %2670 = sst [smem:[#allocation44_spill]] %s2100_s10  ;;  %s2248_s12 = sadd.s32 1, %s2100_s10  }
  0x15   : > { %2671 = sst [smem:[#allocation45_spill]] %s2248_s12  ;;  %s116_s13 = sadd.s32 1, %s2096_s9 }
  0x16   : > { %s113_s14 = ssub.s32 %s2100_s10, %s2248_s12  ;;  %p126_p3 = scmp.ne.s32.totalorder %s2096_s9, %s2092_s8 }
  0x17   : > { %p114_p4 = scmp.eq.s32.totalorder %s113_s14, 0  ;;  %p127_p5 = scmp.eq.s32.totalorder %s2244_s0, 1 }
  0x18   : > { %p132_p6 = scmp.ne.s32.totalorder %s2092_s8, %s2088_s7  ;;  %p133_p7 = scmp.eq.s32.totalorder %s1277_s11, 1 }
  0x19   : > { %s2259_s15 = scalar_select %p114_p4, %s2096_s9, %s116_s13  }
  0x1a   : > { %p2261_p8 = por %p127_p5, %p126_p3  ;;  %p2265_p9 = por %p133_p7, %p132_p6 }
  0x1b   : > { %2672 = sst [smem:[#allocation46_spill]] %s2259_s15  ;;  %p1278_p10 = scmp.ge.s32.totalorder %s2100_s10, 1 }
  0x1c   : > { %s2673_s16 = scalar_select %p2261_p8, 1, 0 }
  0x1d   : > { %s2674_s17 = scalar_select %p2265_p9, 1, 0 }
  0x1e   : > { %p140_p11 = scmp.lt.s32.totalorder %s2100_s10, 3  ;;  %p2654_p12 = scmp.eq.s32.totalorder %s2244_s0, 0 }
  0x1f   : > { %2675 = sst [smem:[#allocation47_spill]] %s2674_s17  ;;  %s2167_s19 = smov [#allocation6]  }
  0x20   : > { %p2272_p13 = pnand %p1278_p10, %p140_p11  ;;  %s152_s20 = sshll.u32 %s2167_s19, 4  ;;  %s153_s20 = int_to_ptr.vmem [resolvable:$true] %s152_s20 }
  0x21   : > { %s2168_s22 = smov [#allocation9]   ;;  %s2678_s2 = sld [smem:[#allocation48_spill]] }
  0x22   : > { %s2676_s18 = scalar_select %p2272_p13, 1, 0 }
  0x23   : > { %p1502_p0 = pneg %p2272_p13  ;;  %s168_s23 = sshll.u32 %s2168_s22, 4  ;;  %s2284_s23 = int_to_ptr.vmem [resolvable:$true] %s168_s23 }
  0x25   : > { %p2280_p1 = pnand %p2654_p12, %p1502_p0 }
  0x27   : > { %s1700_s26 = scalar_lea.hbm %s2678_s2, 2048  ;;  %p1702_p3 = pneg %p2280_p1 }
  0x28   : > { %p1701_p2 = scmp.ne.s32.totalorder %s2678_s2, %s1700_s26  ;;  %p1707_p6 = scmp.lt.u32.totalorder %s1700_s26, %s2678_s2 }
  0x2a   : > { %p1703_p4 = pnand %p1702_p3, %p1701_p2 }
  0x2c   : > { %p1704_p5 = pneg %p1703_p4 }
  0x2e   : > { %p1709_p7 = pnand %p1707_p6, %p1704_p5 }
  0x30   : > { %1712 = shalt.err (!%p1709_p7)
}
  0x31   : > { %s1713_s11 = scalar_lea.vmem %s153_s20, 2048  ;;  %p1721_p12 = scmp.lt.s32.totalorder %s153_s20, %s153_s20 }
  0x32   : > { %p1714_p10 = scmp.ne.s32.totalorder %s153_s20, %s1713_s11  ;;  %p1722_p9 = scmp.lt.s32.totalorder %s1713_s11, %s1713_s11 }
  0x34   : > { %p1716_p11 = pnand %p1714_p10, %p1702_p3  ;;  %p1723_p8 = por %p1722_p9, %p1721_p12 }
  0x36   : > { %p1717_p0 = pneg %p1716_p11 }
  0x38   : > { %p1724_p13 = pnand %p1723_p8, %p1717_p0 }
  0x3a   : > { %1727 = shalt.err (!%p1724_p13)
}
  0x3b   : > { %s2169_s13 = smov 128   ;;  %s2170_s14 = smov 8  }
  0x3c   : > { %1505 = dma.hbm_to_vmem [thread:$0]  (!%p2280_p1), %s2678_s2, 2048, %s153_s20, [#allocation7], %s2169_s13, %s2169_s13, %s2170_s14  }
  0x3d   : > { %s2679_s4 = sld [smem:[#allocation49_spill]] }
  0x43   : > { %s1728_s26 = scalar_lea.hbm %s2679_s4, 2048 }
  0x44   : > { %p1729_p2 = scmp.ne.s32.totalorder %s2679_s4, %s1728_s26  ;;  %p1735_p12 = scmp.lt.u32.totalorder %s1728_s26, %s2679_s4 }
  0x46   : > { %p1731_p8 = pnand %p1729_p2, %p1702_p3 }
  0x48   : > { %p1732_p9 = pneg %p1731_p8 }
  0x4a   : > { %p1737_p13 = pnand %p1735_p12, %p1732_p9 }
  0x4c   : > { %1740 = shalt.err (!%p1737_p13)
}
  0x4d   : > { %s1741_s20 = scalar_lea.vmem %s2284_s23, 2048  ;;  %p1749_p7 = scmp.lt.s32.totalorder %s2284_s23, %s2284_s23 }
  0x4e   : > { %p1742_p4 = scmp.ne.s32.totalorder %s2284_s23, %s1741_s20  ;;  %p1750_p10 = scmp.lt.s32.totalorder %s1741_s20, %s1741_s20 }
  0x50   : > { %p1744_p5 = pnand %p1742_p4, %p1702_p3  ;;  %p1751_p11 = por %p1750_p10, %p1749_p7 }
  0x52   : > { %p1745_p6 = pneg %p1744_p5 }
  0x54   : > { %p1752_p0 = pnand %p1751_p11, %p1745_p6 }
  0x56   : > { %1755 = shalt.err (!%p1752_p0)
}
  0x57   : > { %1508 = dma.hbm_to_vmem [thread:$0]  (!%p2280_p1), %s2679_s4, 2048, %s2284_s23, [#allocation10], %s2169_s13, %s2169_s13, %s2170_s14  }
  0x58   : > { %p2680_p2 = scmp.ne.s32.totalorder %s2676_s18, 0 }
  0x59   : > { %p2681_p8 = scmp.eq.s32.totalorder (!%p2680_p2), %s2244_s0, 0 }
  0x5a   : > { %187 = sbr.rel (%p2680_p2) target bundleno = 1363 (0x553), region = 36 }
  0x61   : > { %2059 = dma.done.wait (%p2681_p8), [#allocation7], 2048   ;;  %p2682_p3 = pmov %p2681_p8 }
  0x63   : > { %2061 = vsyncadd (%p2682_p3), [#allocation7], 4294965248  ;;  %p2683_p9 = pmov %p2682_p3 }
  0x64   : > { %p2684_p12 = pmov %p2682_p3 }
  0x65   : > { %2063 = dma.done.wait (%p2683_p9), [#allocation10], 2048  }
  0x66   : > { %2065 = vsyncadd (%p2684_p12), [#allocation10], 4294965248  ;;  %s2657_s21 = sand.u32 1, %s2092_s8   ;;  %s2345_s23 = sshll.u32 %s2244_s0, 3 }
  0x67   : > { %s2349_s18 = sshll.u32 %s2657_s21, 3  ;;  %s2352_s14 = smov 0  }
  0x68 LB: >> { %s219_s22 = sshra.s32 %s2104_s14, 7  ;;  %s224_s24 = sand.u32 127, %s2104_s14  ;;  %s2104_s14 = sphi %s2352_s14, %s218_s14  }
  0x69   : >> { %s221_s25 = sadd.s32 %s2345_s23, %s219_s22  ;;  %s229_s29 = scalar_lea.vmem [#allocation2], %s2104_s14 }
  0x6a   : >> { %s1286_s26 = sshll.u32 %s221_s25, 7  ;;  %s238_s30 = sshll.u32 %s229_s29, 4  ;;  %s239_s30 = int_to_ptr.vmem [resolvable:$true] %s238_s30 }
  0x6b   : >> { %s225_s27 = sadd.s32 %s1286_s26, %s224_s24  ;;  %s230_s13 = scalar_lea.sflag [#allocation3], %s2104_s14 }
  0x6c   : >> { %s226_s28 = sld [smem:[#allocation5 + %s225_s27]]  ;;  %s2368_s9 = scalar_lea.hbm %s2648_s1, 8192 }
  0x72   : >> { %s1287_s20 = sshll.u32 %s226_s28, 4 }
  0x73   : >> { %s228_s21 = scalar_lea.hbm %s2648_s1, %s1287_s20 }
  0x74   : >> { %s1756_s2 = scalar_lea.hbm %s228_s21, 16  ;;  %p1759_p13 = scmp.lt.u32.totalorder %s228_s21, %s2648_s1 }
  0x75   : >> { %p1757_p1 = scmp.ne.s32.totalorder %s228_s21, %s1756_s2  ;;  %p1760_p4 = scmp.lt.u32.totalorder %s2368_s9, %s1756_s2 }
  0x76   : >> { %p1762_p6 = scmp.lt.u32.totalorder %s1756_s2, %s228_s21 }
  0x77   : >> { %p1761_p5 = por %p1760_p4, %p1759_p13 }
  0x79   : >> { %p1763_p7 = por %p1762_p6, %p1761_p5 }
  0x7b   : >> { %p1764_p10 = pnand %p1763_p7, %p1757_p1 }
  0x7d   : >> { %1767 = shalt.err (!%p1764_p10)  }
  0x7e   : >> { %s1768_s24 = scalar_lea.vmem %s239_s30, 16  ;;  %s2171_s26 = smov [#allocation2]  }
  0x7f   : >> { %p1769_p11 = scmp.ne.s32.totalorder %s239_s30, %s1768_s24  ;;  %s1770_s27 = sshll.u32 %s2171_s26, 4  ;;  %s2374_s27 = int_to_ptr.vmem [resolvable:$false] %s1770_s27 }
  0x80   : >> { %s2377_s4 = scalar_lea.vmem %s2374_s27, 512  ;;  %p1773_p0 = scmp.lt.s32.totalorder %s239_s30, %s2374_s27 }
  0x81   : >> { %p1774_p2 = scmp.lt.s32.totalorder %s2377_s4, %s1768_s24 }
  0x83   : >> { %p1775_p8 = por %p1774_p2, %p1773_p0 }
  0x85   : >> { %p1776_p3 = pnand %p1775_p8, %p1769_p11 }
  0x87   : >> { %1779 = shalt.err (!%p1776_p3)  }
  0x88   : >> { %241 = dma.hbm_to_vmem [thread:$0]  %s228_s21, 16, %s239_s30, %s230_s13 }
  0x89   : >> { %s218_s14 = sadd.s32 1, %s2104_s14  }
  0x8a   : >> { %p215_p9 = scmp.ge.s32.totalorder %s218_s14, 16  }
  0x8b   : > { %s2106_s2 = smov (%p215_p9), 0  }
  0x8c   : > { %217 = sbr.rel (!%p215_p9) target bundleno = 104 (0x68), region = 285 }
  0x93 LB: >> { %s248_s15 = scalar_lea.sflag [#allocation3], %s2108_s2  ;;  %s2108_s2 = sphi %s2106_s2, %s247_s2  }
  0x94   : >> { %2066 = dma.done.wait %s248_s15, 16 }
  0x95   : >> { %2067 = vsyncadd %s248_s15, 4294967280  ;;  %s247_s2 = sadd.s32 1, %s2108_s2  }
  0x96   : >> { %p244_p12 = scmp.ge.s32.totalorder %s247_s2, 16  }
  0x97   : > { %s252_s28 = sadd.s32 (%p244_p12), 1, %s2345_s23  ;;  %s2385_s21 = smov (%p244_p12), 0  }
  0x98   : > { %246 = sbr.rel (!%p244_p12) target bundleno = 147 (0x93), region = 296 }
  0x9f LB: >> { %s259_s13 = sshra.s32 %s2112_s21, 7  ;;  %s264_s14 = sand.u32 127, %s2112_s21  ;;  %s2112_s21 = sphi %s2385_s21, %s258_s21  }
  0xa0   : >> { %s261_s29 = sadd.s32 %s259_s13, %s252_s28  ;;  %s1111_s11 = scalar_lea.vmem [#allocation2], %s2112_s21 }
  0xa1   : >> { %s1288_s30 = sshll.u32 %s261_s29, 7  ;;  %s1112_s19 = scalar_lea.vmem %s1111_s11, 16 [#allocation2] }
  0xa2   : >> { %s265_s20 = sadd.s32 %s1288_s30, %s264_s14  ;;  %s279_s25 = sshll.u32 %s1112_s19, 4  ;;  %s280_s25 = int_to_ptr.vmem [resolvable:$true] %s279_s25 }
  0xa3   : >> { %s266_s22 = sld [smem:[#allocation5 + %s265_s20]]  ;;  %s1113_s24 = scalar_lea.sflag [#allocation3], %s2112_s21 }
  0xa4   : >> { %s1114_s26 = scalar_lea.sflag %s1113_s24, 16 [#allocation3] }
  0xa9   : >> { %s1289_s2 = sshll.u32 %s266_s22, 4 }
  0xaa   : >> { %s268_s17 = scalar_lea.hbm %s2648_s1, %s1289_s2 }
  0xab   : >> { %s1780_s7 = scalar_lea.hbm %s268_s17, 16  ;;  %p1783_p13 = scmp.lt.u32.totalorder %s268_s17, %s2648_s1 }
  0xac   : >> { %p1781_p1 = scmp.ne.s32.totalorder %s268_s17, %s1780_s7  ;;  %p1784_p4 = scmp.lt.u32.totalorder %s2368_s9, %s1780_s7 }
  0xad   : >> { %p1786_p6 = scmp.lt.u32.totalorder %s1780_s7, %s268_s17 }
  0xae   : >> { %p1785_p5 = por %p1784_p4, %p1783_p13 }
  0xb0   : >> { %p1787_p7 = por %p1786_p6, %p1785_p5 }
  0xb2   : >> { %p1788_p10 = pnand %p1787_p7, %p1781_p1 }
  0xb4   : >> { %1791 = shalt.err (!%p1788_p10)  }
  0xb5   : >> { %s1792_s13 = scalar_lea.vmem %s280_s25, 16  ;;  %p1797_p0 = scmp.lt.s32.totalorder %s280_s25, %s2374_s27 }
  0xb6   : >> { %p1793_p11 = scmp.ne.s32.totalorder %s280_s25, %s1792_s13  ;;  %p1798_p2 = scmp.lt.s32.totalorder %s2377_s4, %s1792_s13 }
  0xb8   : >> { %p1799_p8 = por %p1798_p2, %p1797_p0 }
  0xba   : >> { %p1800_p3 = pnand %p1799_p8, %p1793_p11 }
  0xbc   : >> { %1803 = shalt.err (!%p1800_p3)  }
  0xbd   : >> { %282 = dma.hbm_to_vmem [thread:$0]  %s268_s17, 16, %s280_s25, %s1114_s26 }
  0xbe   : >> { %s258_s21 = sadd.s32 1, %s2112_s21  }
  0xbf   : >> { %p255_p9 = scmp.ge.s32.totalorder %s258_s21, 16  }
  0xc0   : > { %v283_v0 = vld [vmem:[#allocation2] sm:$0xff] (%p255_p9)  ;;  %v284_v1 = vld [vmem:[#allocation2 + $0x8] sm:$0xff] (%p255_p9)  ;;  %s2114_s6 = smov (%p255_p9), 0  }
  0xc1   : > { %257 = sbr.rel (!%p255_p9) target bundleno = 159 (0x9f), region = 307  ;;  %v285_v2 = vadd.f32 (%p255_p9), %v284_v1, %v283_v0 }
  0xc3   : > { %v286_v3 = vrot.slane (%p255_p9), %v285_v2, 4 }
  0xc5   : > { %v287_v4 = vadd.f32 (%p255_p9), %v286_v3, %v285_v2 }
  0xc7   : > { %v288_v5 = vrot.slane (%p255_p9), %v287_v4, 2 }
  0xc9   : > { %v289_v6 = vadd.f32 %v288_v5, %v287_v4 }
  0xcb   : > { %v290_v7 = vrot.slane %v289_v6, 1 }
  0xcd   : > { %v2408_v8 = vadd.f32 %v290_v7, %v289_v6 }
  0xce LB: >> { %s1115_s7 = scalar_lea.sflag [#allocation3], %s2116_s6  ;;  %s2116_s6 = sphi %s2114_s6, %s298_s6  }
  0xcf   : >> { %s1116_s10 = scalar_lea.sflag %s1115_s7, 16 [#allocation3] }
  0xd0   : >> { %2068 = dma.done.wait %s1116_s10, 16 }
  0xd1   : >> { %2069 = vsyncadd %s1116_s10, 4294967280  ;;  %s298_s6 = sadd.s32 1, %s2116_s6  }
  0xd2   : >> { %p295_p12 = scmp.ge.s32.totalorder %s298_s6, 16  }
  0xd3   : > { %s304_s12 = sadd.s32 (%p295_p12), 2, %s2345_s23  ;;  %s2411_s17 = smov (%p295_p12), 0  }
  0xd4   : > { %297 = sbr.rel (!%p295_p12) target bundleno = 206 (0xce), region = 318 }
  0xdb LB: >> { %s311_s28 = sshra.s32 %s2120_s17, 7  ;;  %s316_s21 = sand.u32 127, %s2120_s17  ;;  %s2120_s17 = sphi %s2411_s17, %s310_s17  }
  0xdc   : >> { %s313_s14 = sadd.s32 %s311_s28, %s304_s12  ;;  %s321_s11 = scalar_lea.vmem [#allocation2], %s2120_s17 }
  0xdd   : >> { %s1290_s29 = sshll.u32 %s313_s14, 7  ;;  %s330_s19 = sshll.u32 %s321_s11, 4  ;;  %s331_s19 = int_to_ptr.vmem [resolvable:$true] %s330_s19 }
  0xde   : >> { %s317_s30 = sadd.s32 %s1290_s29, %s316_s21  ;;  %s322_s2 = scalar_lea.sflag [#allocation3], %s2120_s17 }
  0xdf   : >> { %s318_s20 = sld [smem:[#allocation5 + %s317_s30]] }
  0xe5   : >> { %s1291_s22 = sshll.u32 %s318_s20, 4 }
  0xe6   : >> { %s320_s26 = scalar_lea.hbm %s2648_s1, %s1291_s22 }
  0xe7   : >> { %s1804_s15 = scalar_lea.hbm %s320_s26, 16  ;;  %p1807_p13 = scmp.lt.u32.totalorder %s320_s26, %s2648_s1 }
  0xe8   : >> { %p1805_p1 = scmp.ne.s32.totalorder %s320_s26, %s1804_s15  ;;  %p1808_p4 = scmp.lt.u32.totalorder %s2368_s9, %s1804_s15 }
  0xe9   : >> { %p1810_p6 = scmp.lt.u32.totalorder %s1804_s15, %s320_s26 }
  0xea   : >> { %p1809_p5 = por %p1808_p4, %p1807_p13 }
  0xec   : >> { %p1811_p7 = por %p1810_p6, %p1809_p5 }
  0xee   : >> { %p1812_p10 = pnand %p1811_p7, %p1805_p1 }
  0xf0   : >> { %1815 = shalt.err (!%p1812_p10)  }
  0xf1   : >> { %s1816_s7 = scalar_lea.vmem %s331_s19, 16  ;;  %p1821_p0 = scmp.lt.s32.totalorder %s331_s19, %s2374_s27 }
  0xf2   : >> { %p1817_p11 = scmp.ne.s32.totalorder %s331_s19, %s1816_s7  ;;  %p1822_p2 = scmp.lt.s32.totalorder %s2377_s4, %s1816_s7 }
  0xf4   : >> { %p1823_p8 = por %p1822_p2, %p1821_p0 }
  0xf6   : >> { %p1824_p3 = pnand %p1823_p8, %p1817_p11 }
  0xf8   : >> { %1827 = shalt.err (!%p1824_p3)  }
  0xf9   : >> { %333 = dma.hbm_to_vmem [thread:$0]  %s320_s26, 16, %s331_s19, %s322_s2 }
  0xfa   : >> { %s310_s17 = sadd.s32 1, %s2120_s17  }
  0xfb   : >> { %p307_p9 = scmp.ge.s32.totalorder %s310_s17, 16  }
  0xfc   : > { %v335_v9 = vld [vmem:[#allocation2 + $0x10] sm:$0xff] (%p307_p9)  ;;  %v336_v10 = vld [vmem:[#allocation2 + $0x18] sm:$0xff] (%p307_p9)  ;;  %s2122_s10 = smov (%p307_p9), 0  }
  0xfd   : > { %309 = sbr.rel (!%p307_p9) target bundleno = 219 (0xdb), region = 329  ;;  %v337_v11 = vadd.f32 (%p307_p9), %v336_v10, %v335_v9 }
  0xff   : > { %v338_v12 = vrot.slane (%p307_p9), %v337_v11, 4 }
 0x101   : > { %v339_v13 = vadd.f32 (%p307_p9), %v338_v12, %v337_v11 }
 0x103   : > { %v340_v14 = vrot.slane (%p307_p9), %v339_v13, 2 }
 0x105   : > { %v341_v15 = vadd.f32 %v340_v14, %v339_v13 }
 0x107   : > { %v342_v16 = vrot.slane %v341_v15, 1 }
 0x109   : > { %v2434_v17 = vadd.f32 %v342_v16, %v341_v15 }
 0x10a LB: >> { %s351_s28 = scalar_lea.sflag [#allocation3], %s2124_s10  ;;  %s2124_s10 = sphi %s2122_s10, %s350_s10  }
 0x10b   : >> { %2070 = dma.done.wait %s351_s28, 16 }
 0x10c   : >> { %2071 = vsyncadd %s351_s28, 4294967280  ;;  %s350_s10 = sadd.s32 1, %s2124_s10  }
 0x10d   : >> { %p347_p12 = scmp.ge.s32.totalorder %s350_s10, 16  }
 0x10e   : > { %s355_s12 = sadd.s32 (%p347_p12), 3, %s2345_s23  ;;  %s2437_s17 = smov (%p347_p12), 0  }
 0x10f   : > { %349 = sbr.rel (!%p347_p12) target bundleno = 266 (0x10a), region = 340 }
 0x116 LB: >> { %s362_s21 = sshra.s32 %s2128_s17, 7  ;;  %s367_s14 = sand.u32 127, %s2128_s17  ;;  %s2128_s17 = sphi %s2437_s17, %s361_s17  }
 0x117   : >> { %s364_s29 = sadd.s32 %s362_s21, %s355_s12  ;;  %s1124_s11 = scalar_lea.vmem [#allocation2], %s2128_s17 }
 0x118   : >> { %s1292_s30 = sshll.u32 %s364_s29, 7  ;;  %s1125_s19 = scalar_lea.vmem %s1124_s11, 16 [#allocation2] }
 0x119   : >> { %s368_s20 = sadd.s32 %s1292_s30, %s367_s14  ;;  %s382_s25 = sshll.u32 %s1125_s19, 4  ;;  %s383_s25 = int_to_ptr.vmem [resolvable:$true] %s382_s25 }
 0x11a   : >> { %s369_s22 = sld [smem:[#allocation5 + %s368_s20]]  ;;  %s1126_s24 = scalar_lea.sflag [#allocation3], %s2128_s17 }
 0x11b   : >> { %s1127_s26 = scalar_lea.sflag %s1126_s24, 16 [#allocation3] }
 0x120   : >> { %s1293_s2 = sshll.u32 %s369_s22, 4 }
 0x121   : >> { %s371_s6 = scalar_lea.hbm %s2648_s1, %s1293_s2 }
 0x122   : >> { %s1828_s7 = scalar_lea.hbm %s371_s6, 16  ;;  %p1831_p13 = scmp.lt.u32.totalorder %s371_s6, %s2648_s1 }
 0x123   : >> { %p1829_p1 = scmp.ne.s32.totalorder %s371_s6, %s1828_s7  ;;  %p1832_p4 = scmp.lt.u32.totalorder %s2368_s9, %s1828_s7 }
 0x124   : >> { %p1834_p6 = scmp.lt.u32.totalorder %s1828_s7, %s371_s6 }
 0x125   : >> { %p1833_p5 = por %p1832_p4, %p1831_p13 }
 0x127   : >> { %p1835_p7 = por %p1834_p6, %p1833_p5 }
 0x129   : >> { %p1836_p10 = pnand %p1835_p7, %p1829_p1 }
 0x12b   : >> { %1839 = shalt.err (!%p1836_p10)  }
 0x12c   : >> { %s1840_s21 = scalar_lea.vmem %s383_s25, 16  ;;  %p1845_p0 = scmp.lt.s32.totalorder %s383_s25, %s2374_s27 }
 0x12d   : >> { %p1841_p11 = scmp.ne.s32.totalorder %s383_s25, %s1840_s21  ;;  %p1846_p2 = scmp.lt.s32.totalorder %s2377_s4, %s1840_s21 }
 0x12f   : >> { %p1847_p8 = por %p1846_p2, %p1845_p0 }
 0x131   : >> { %p1848_p3 = pnand %p1847_p8, %p1841_p11 }
 0x133   : >> { %1851 = shalt.err (!%p1848_p3)  }
 0x134   : >> { %385 = dma.hbm_to_vmem [thread:$0]  %s371_s6, 16, %s383_s25, %s1127_s26 }
 0x135   : >> { %s361_s17 = sadd.s32 1, %s2128_s17  }
 0x136   : >> { %p358_p9 = scmp.ge.s32.totalorder %s361_s17, 16  }
 0x137   : > { %v386_v18 = vld [vmem:[#allocation2] sm:$0xff] (%p358_p9)  ;;  %v387_v19 = vld [vmem:[#allocation2 + $0x8] sm:$0xff] (%p358_p9)  ;;  %s2130_s14 = smov (%p358_p9), 0  }
 0x138   : > { %360 = sbr.rel (!%p358_p9) target bundleno = 278 (0x116), region = 351  ;;  %v388_v20 = vadd.f32 (%p358_p9), %v387_v19, %v386_v18 }
 0x13a   : > { %v389_v21 = vrot.slane (%p358_p9), %v388_v20, 4 }
 0x13c   : > { %v390_v22 = vadd.f32 (%p358_p9), %v389_v21, %v388_v20 }
 0x13e   : > { %v391_v23 = vrot.slane (%p358_p9), %v390_v22, 2 }
 0x140   : > { %v392_v24 = vadd.f32 %v391_v23, %v390_v22 }
 0x142   : > { %v393_v25 = vrot.slane %v392_v24, 1 }
 0x144   : > { %v2460_v26 = vadd.f32 %v393_v25, %v392_v24 }
 0x145 LB: >> { %s1128_s29 = scalar_lea.sflag [#allocation3], %s2132_s14  ;;  %s2132_s14 = sphi %s2130_s14, %s401_s14  }
 0x146   : >> { %s1129_s30 = scalar_lea.sflag %s1128_s29, 16 [#allocation3] }
 0x147   : >> { %2072 = dma.done.wait %s1129_s30, 16 }
 0x148   : >> { %2073 = vsyncadd %s1129_s30, 4294967280  ;;  %s401_s14 = sadd.s32 1, %s2132_s14  }
 0x149   : >> { %p398_p12 = scmp.ge.s32.totalorder %s401_s14, 16  }
 0x14a   : > { %s407_s12 = sadd.s32 (%p398_p12), 4, %s2345_s23  ;;  %s2463_s17 = smov (%p398_p12), 0  }
 0x14b   : > { %400 = sbr.rel (!%p398_p12) target bundleno = 325 (0x145), region = 362 }
 0x152 LB: >> { %s414_s20 = sshra.s32 %s2136_s17, 7  ;;  %s419_s11 = sand.u32 127, %s2136_s17  ;;  %s2136_s17 = sphi %s2463_s17, %s413_s17  }
 0x153   : >> { %s416_s19 = sadd.s32 %s414_s20, %s407_s12  ;;  %s424_s26 = scalar_lea.vmem [#allocation2], %s2136_s17 }
 0x154   : >> { %s1294_s22 = sshll.u32 %s416_s19, 7  ;;  %s433_s2 = sshll.u32 %s424_s26, 4  ;;  %s434_s2 = int_to_ptr.vmem [resolvable:$true] %s433_s2 }
 0x155   : >> { %s420_s25 = sadd.s32 %s1294_s22, %s419_s11  ;;  %s425_s10 = scalar_lea.sflag [#allocation3], %s2136_s17 }
 0x156   : >> { %s421_s24 = sld [smem:[#allocation5 + %s420_s25]] }
 0x15c   : >> { %s1295_s15 = sshll.u32 %s421_s24, 4 }
 0x15d   : >> { %s423_s7 = scalar_lea.hbm %s2648_s1, %s1295_s15 }
 0x15e   : >> { %s1852_s28 = scalar_lea.hbm %s423_s7, 16  ;;  %p1855_p13 = scmp.lt.u32.totalorder %s423_s7, %s2648_s1 }
 0x15f   : >> { %p1853_p1 = scmp.ne.s32.totalorder %s423_s7, %s1852_s28  ;;  %p1856_p4 = scmp.lt.u32.totalorder %s2368_s9, %s1852_s28 }
 0x160   : >> { %p1858_p6 = scmp.lt.u32.totalorder %s1852_s28, %s423_s7 }
 0x161   : >> { %p1857_p5 = por %p1856_p4, %p1855_p13 }
 0x163   : >> { %p1859_p7 = por %p1858_p6, %p1857_p5 }
 0x165   : >> { %p1860_p10 = pnand %p1859_p7, %p1853_p1 }
 0x167   : >> { %1863 = shalt.err (!%p1860_p10)  }
 0x168   : >> { %s1864_s29 = scalar_lea.vmem %s434_s2, 16  ;;  %p1869_p0 = scmp.lt.s32.totalorder %s434_s2, %s2374_s27 }
 0x169   : >> { %p1865_p11 = scmp.ne.s32.totalorder %s434_s2, %s1864_s29  ;;  %p1870_p2 = scmp.lt.s32.totalorder %s2377_s4, %s1864_s29 }
 0x16b   : >> { %p1871_p8 = por %p1870_p2, %p1869_p0 }
 0x16d   : >> { %p1872_p3 = pnand %p1871_p8, %p1865_p11 }
 0x16f   : >> { %1875 = shalt.err (!%p1872_p3)  }
 0x170   : >> { %436 = dma.hbm_to_vmem [thread:$0]  %s423_s7, 16, %s434_s2, %s425_s10 }
 0x171   : >> { %s413_s17 = sadd.s32 1, %s2136_s17  }
 0x172   : >> { %p410_p9 = scmp.ge.s32.totalorder %s413_s17, 16  }
 0x173   : > { %v437_v27 = vld [vmem:[#allocation2 + $0x10] sm:$0xff] (%p410_p9)  ;;  %v438_v28 = vld [vmem:[#allocation2 + $0x18] sm:$0xff] (%p410_p9)  ;;  %s2138_s30 = smov (%p410_p9), 0  }
 0x174   : > { %412 = sbr.rel (!%p410_p9) target bundleno = 338 (0x152), region = 373  ;;  %v439_v29 = vadd.f32 (%p410_p9), %v438_v28, %v437_v27 }
 0x176   : > { %v440_v30 = vrot.slane (%p410_p9), %v439_v29, 4 }
 0x178   : > { %v441_v31 = vadd.f32 (%p410_p9), %v440_v30, %v439_v29 }
 0x17a   : > { %v442_v32 = vrot.slane (%p410_p9), %v441_v31, 2 }
 0x17c   : > { %v443_v33 = vadd.f32 %v442_v32, %v441_v31 }
 0x17e   : > { %v444_v34 = vrot.slane %v443_v33, 1 }
 0x180   : > { %v2486_v35 = vadd.f32 %v444_v34, %v443_v33 }
 0x181 LB: >> { %s453_s20 = scalar_lea.sflag [#allocation3], %s2140_s30  ;;  %s2140_s30 = sphi %s2138_s30, %s452_s30  }
 0x182   : >> { %2074 = dma.done.wait %s453_s20, 16 }
 0x183   : >> { %2075 = vsyncadd %s453_s20, 4294967280  ;;  %s452_s30 = sadd.s32 1, %s2140_s30  }
 0x184   : >> { %p449_p12 = scmp.ge.s32.totalorder %s452_s30, 16  }
 0x185   : > { %s457_s12 = sadd.s32 (%p449_p12), 5, %s2345_s23  ;;  %s2489_s17 = smov (%p449_p12), 0  }
 0x186   : > { %451 = sbr.rel (!%p449_p12) target bundleno = 385 (0x181), region = 384 }
 0x18d LB: >> { %s464_s11 = sshra.s32 %s2144_s17, 7  ;;  %s469_s19 = sand.u32 127, %s2144_s17  ;;  %s2144_s17 = sphi %s2489_s17, %s463_s17  }
 0x18e   : >> { %s466_s22 = sadd.s32 %s464_s11, %s457_s12  ;;  %s1137_s26 = scalar_lea.vmem [#allocation2], %s2144_s17 }
 0x18f   : >> { %s1296_s25 = sshll.u32 %s466_s22, 7  ;;  %s1138_s2 = scalar_lea.vmem %s1137_s26, 16 [#allocation2] }
 0x190   : >> { %s470_s24 = sadd.s32 %s1296_s25, %s469_s19  ;;  %s484_s13 = sshll.u32 %s1138_s2, 4  ;;  %s485_s13 = int_to_ptr.vmem [resolvable:$true] %s484_s13 }
 0x191   : >> { %s471_s15 = sld [smem:[#allocation5 + %s470_s24]]  ;;  %s1139_s6 = scalar_lea.sflag [#allocation3], %s2144_s17 }
 0x192   : >> { %s1140_s7 = scalar_lea.sflag %s1139_s6, 16 [#allocation3] }
 0x197   : >> { %s1297_s10 = sshll.u32 %s471_s15, 4 }
 0x198   : >> { %s473_s14 = scalar_lea.hbm %s2648_s1, %s1297_s10 }
 0x199   : >> { %s1876_s29 = scalar_lea.hbm %s473_s14, 16  ;;  %p1879_p13 = scmp.lt.u32.totalorder %s473_s14, %s2648_s1 }
 0x19a   : >> { %p1877_p1 = scmp.ne.s32.totalorder %s473_s14, %s1876_s29  ;;  %p1880_p4 = scmp.lt.u32.totalorder %s2368_s9, %s1876_s29 }
 0x19b   : >> { %p1882_p6 = scmp.lt.u32.totalorder %s1876_s29, %s473_s14 }
 0x19c   : >> { %p1881_p5 = por %p1880_p4, %p1879_p13 }
 0x19e   : >> { %p1883_p7 = por %p1882_p6, %p1881_p5 }
 0x1a0   : >> { %p1884_p10 = pnand %p1883_p7, %p1877_p1 }
 0x1a2   : >> { %1887 = shalt.err (!%p1884_p10)  }
 0x1a3   : >> { %s1888_s11 = scalar_lea.vmem %s485_s13, 16  ;;  %p1893_p0 = scmp.lt.s32.totalorder %s485_s13, %s2374_s27 }
 0x1a4   : >> { %p1889_p11 = scmp.ne.s32.totalorder %s485_s13, %s1888_s11  ;;  %p1894_p2 = scmp.lt.s32.totalorder %s2377_s4, %s1888_s11 }
 0x1a6   : >> { %p1895_p8 = por %p1894_p2, %p1893_p0 }
 0x1a8   : >> { %p1896_p3 = pnand %p1895_p8, %p1889_p11 }
 0x1aa   : >> { %1899 = shalt.err (!%p1896_p3)  }
 0x1ab   : >> { %487 = dma.hbm_to_vmem [thread:$0]  %s473_s14, 16, %s485_s13, %s1140_s7 }
 0x1ac   : >> { %s463_s17 = sadd.s32 1, %s2144_s17  }
 0x1ad   : >> { %p460_p9 = scmp.ge.s32.totalorder %s463_s17, 16  }
 0x1ae   : > { %v488_v36 = vld [vmem:[#allocation2] sm:$0xff] (%p460_p9)  ;;  %v489_v37 = vld [vmem:[#allocation2 + $0x8] sm:$0xff] (%p460_p9)  ;;  %s2146_s19 = smov (%p460_p9), 0  }
 0x1af   : > { %462 = sbr.rel (!%p460_p9) target bundleno = 397 (0x18d), region = 395  ;;  %v490_v38 = vadd.f32 (%p460_p9), %v489_v37, %v488_v36 }
 0x1b1   : > { %v491_v39 = vrot.slane (%p460_p9), %v490_v38, 4 }
 0x1b3   : > { %v492_v40 = vadd.f32 (%p460_p9), %v491_v39, %v490_v38 }
 0x1b5   : > { %v493_v41 = vrot.slane (%p460_p9), %v492_v40, 2 }
 0x1b7   : > { %v494_v42 = vadd.f32 %v493_v41, %v492_v40 }
 0x1b9   : > { %v495_v43 = vrot.slane %v494_v42, 1 }
 0x1bb   : > { %v2512_v44 = vadd.f32 %v495_v43, %v494_v42 }
 0x1bc LB: >> { %s1141_s22 = scalar_lea.sflag [#allocation3], %s2148_s19  ;;  %s2148_s19 = sphi %s2146_s19, %s503_s19  }
 0x1bd   : >> { %s1142_s25 = scalar_lea.sflag %s1141_s22, 16 [#allocation3] }
 0x1be   : >> { %2076 = dma.done.wait %s1142_s25, 16 }
 0x1bf   : >> { %2077 = vsyncadd %s1142_s25, 4294967280  ;;  %s503_s19 = sadd.s32 1, %s2148_s19  }
 0x1c0   : >> { %p500_p12 = scmp.ge.s32.totalorder %s503_s19, 16  }
 0x1c1   : > { %s509_s12 = sadd.s32 (%p500_p12), 6, %s2345_s23  ;;  %s2515_s17 = smov (%p500_p12), 0  }
 0x1c2   : > { %502 = sbr.rel (!%p500_p12) target bundleno = 444 (0x1bc), region = 406 }
 0x1c9 LB: >> { %s516_s24 = sshra.s32 %s2152_s17, 7  ;;  %s521_s26 = sand.u32 127, %s2152_s17  ;;  %s2152_s17 = sphi %s2515_s17, %s515_s17  }
 0x1ca   : >> { %s518_s2 = sadd.s32 %s516_s24, %s509_s12  ;;  %s526_s7 = scalar_lea.vmem [#allocation2], %s2152_s17 }
 0x1cb   : >> { %s1298_s15 = sshll.u32 %s518_s2, 7  ;;  %s535_s10 = sshll.u32 %s526_s7, 4  ;;  %s536_s10 = int_to_ptr.vmem [resolvable:$true] %s535_s10 }
 0x1cc   : >> { %s522_s13 = sadd.s32 %s1298_s15, %s521_s26  ;;  %s527_s30 = scalar_lea.sflag [#allocation3], %s2152_s17 }
 0x1cd   : >> { %s523_s6 = sld [smem:[#allocation5 + %s522_s13]] }
 0x1d3   : >> { %s1299_s28 = sshll.u32 %s523_s6, 4 }
 0x1d4   : >> { %s525_s29 = scalar_lea.hbm %s2648_s1, %s1299_s28 }
 0x1d5   : >> { %s1900_s20 = scalar_lea.hbm %s525_s29, 16  ;;  %p1903_p13 = scmp.lt.u32.totalorder %s525_s29, %s2648_s1 }
 0x1d6   : >> { %p1901_p1 = scmp.ne.s32.totalorder %s525_s29, %s1900_s20  ;;  %p1904_p4 = scmp.lt.u32.totalorder %s2368_s9, %s1900_s20 }
 0x1d7   : >> { %p1906_p6 = scmp.lt.u32.totalorder %s1900_s20, %s525_s29 }
 0x1d8   : >> { %p1905_p5 = por %p1904_p4, %p1903_p13 }
 0x1da   : >> { %p1907_p7 = por %p1906_p6, %p1905_p5 }
 0x1dc   : >> { %p1908_p10 = pnand %p1907_p7, %p1901_p1 }
 0x1de   : >> { %1911 = shalt.err (!%p1908_p10)  }
 0x1df   : >> { %s1912_s22 = scalar_lea.vmem %s536_s10, 16  ;;  %p1917_p0 = scmp.lt.s32.totalorder %s536_s10, %s2374_s27 }
 0x1e0   : >> { %p1913_p11 = scmp.ne.s32.totalorder %s536_s10, %s1912_s22  ;;  %p1918_p2 = scmp.lt.s32.totalorder %s2377_s4, %s1912_s22 }
 0x1e2   : >> { %p1919_p8 = por %p1918_p2, %p1917_p0 }
 0x1e4   : >> { %p1920_p3 = pnand %p1919_p8, %p1913_p11 }
 0x1e6   : >> { %1923 = shalt.err (!%p1920_p3)  }
 0x1e7   : >> { %538 = dma.hbm_to_vmem [thread:$0]  %s525_s29, 16, %s536_s10, %s527_s30 }
 0x1e8   : >> { %s515_s17 = sadd.s32 1, %s2152_s17  }
 0x1e9   : >> { %p512_p9 = scmp.ge.s32.totalorder %s515_s17, 16  }
 0x1ea   : > { %v539_v45 = vld [vmem:[#allocation2 + $0x10] sm:$0xff] (%p512_p9)  ;;  %v540_v46 = vld [vmem:[#allocation2 + $0x18] sm:$0xff] (%p512_p9)  ;;  %s2154_s25 = smov (%p512_p9), 0  }
 0x1eb   : > { %514 = sbr.rel (!%p512_p9) target bundleno = 457 (0x1c9), region = 417  ;;  %v541_v47 = vadd.f32 (%p512_p9), %v540_v46, %v539_v45 }
 0x1ed   : > { %v542_v48 = vrot.slane (%p512_p9), %v541_v47, 4 }
 0x1ef   : > { %v543_v49 = vadd.f32 (%p512_p9), %v542_v48, %v541_v47 }
 0x1f1   : > { %v544_v50 = vrot.slane (%p512_p9), %v543_v49, 2 }
 0x1f3   : > { %v545_v51 = vadd.f32 %v544_v50, %v543_v49 }
 0x1f5   : > { %v546_v52 = vrot.slane %v545_v51, 1 }
 0x1f7   : > { %v2538_v53 = vadd.f32 %v546_v52, %v545_v51 }
 0x1f8 LB: >> { %s555_s24 = scalar_lea.sflag [#allocation3], %s2156_s25  ;;  %s2156_s25 = sphi %s2154_s25, %s554_s25  }
 0x1f9   : >> { %2078 = dma.done.wait %s555_s24, 16 }
 0x1fa   : >> { %2079 = vsyncadd %s555_s24, 4294967280  ;;  %s554_s25 = sadd.s32 1, %s2156_s25  }
 0x1fb   : >> { %p551_p12 = scmp.ge.s32.totalorder %s554_s25, 16  }
 0x1fc   : > { %s559_s12 = sadd.s32 (%p551_p12), 7, %s2345_s23  ;;  %s2541_s17 = smov (%p551_p12), 0  }
 0x1fd   : > { %553 = sbr.rel (!%p551_p12) target bundleno = 504 (0x1f8), region = 428 }
 0x204 LB: >> { %s566_s26 = sshra.s32 %s2160_s17, 7  ;;  %s571_s2 = sand.u32 127, %s2160_s17  ;;  %s2160_s17 = sphi %s2541_s17, %s565_s17  }
 0x205   : >> { %s568_s15 = sadd.s32 %s566_s26, %s559_s12  ;;  %s1150_s7 = scalar_lea.vmem [#allocation2], %s2160_s17 }
 0x206   : >> { %s1300_s13 = sshll.u32 %s568_s15, 7  ;;  %s1151_s10 = scalar_lea.vmem %s1150_s7, 16 [#allocation2] }
 0x207   : >> { %s572_s6 = sadd.s32 %s1300_s13, %s571_s2  ;;  %s586_s21 = sshll.u32 %s1151_s10, 4  ;;  %s587_s21 = int_to_ptr.vmem [resolvable:$true] %s586_s21 }
 0x208   : >> { %s573_s28 = sld [smem:[#allocation5 + %s572_s6]]  ;;  %s1152_s14 = scalar_lea.sflag [#allocation3], %s2160_s17 }
 0x209   : >> { %s1153_s29 = scalar_lea.sflag %s1152_s14, 16 [#allocation3] }
 0x20e   : >> { %s1301_s30 = sshll.u32 %s573_s28, 4 }
 0x20f   : >> { %s575_s19 = scalar_lea.hbm %s2648_s1, %s1301_s30 }
 0x210   : >> { %s1924_s22 = scalar_lea.hbm %s575_s19, 16  ;;  %p1927_p13 = scmp.lt.u32.totalorder %s575_s19, %s2648_s1 }
 0x211   : >> { %p1925_p1 = scmp.ne.s32.totalorder %s575_s19, %s1924_s22  ;;  %p1928_p4 = scmp.lt.u32.totalorder %s2368_s9, %s1924_s22 }
 0x212   : >> { %p1930_p6 = scmp.lt.u32.totalorder %s1924_s22, %s575_s19 }
 0x213   : >> { %p1929_p5 = por %p1928_p4, %p1927_p13 }
 0x215   : >> { %p1931_p7 = por %p1930_p6, %p1929_p5 }
 0x217   : >> { %p1932_p10 = pnand %p1931_p7, %p1925_p1 }
 0x219   : >> { %1935 = shalt.err (!%p1932_p10)  }
 0x21a   : >> { %s1936_s26 = scalar_lea.vmem %s587_s21, 16  ;;  %p1941_p0 = scmp.lt.s32.totalorder %s587_s21, %s2374_s27 }
 0x21b   : >> { %p1937_p11 = scmp.ne.s32.totalorder %s587_s21, %s1936_s26  ;;  %p1942_p2 = scmp.lt.s32.totalorder %s2377_s4, %s1936_s26 }
 0x21d   : >> { %p1943_p8 = por %p1942_p2, %p1941_p0 }
 0x21f   : >> { %p1944_p3 = pnand %p1943_p8, %p1937_p11 }
 0x221   : >> { %1947 = shalt.err (!%p1944_p3)  }
 0x222   : >> { %589 = dma.hbm_to_vmem [thread:$0]  %s575_s19, 16, %s587_s21, %s1153_s29 }
 0x223   : >> { %s565_s17 = sadd.s32 1, %s2160_s17  }
 0x224   : >> { %p562_p9 = scmp.ge.s32.totalorder %s565_s17, 16  }
 0x225   : > { %v590_v54 = vld [vmem:[#allocation2] sm:$0xff] (%p562_p9)  ;;  %v591_v55 = vld [vmem:[#allocation2 + $0x8] sm:$0xff] (%p562_p9)  ;;  %s2162_s2 = smov (%p562_p9), 0  }
 0x226   : > { %564 = sbr.rel (!%p562_p9) target bundleno = 516 (0x204), region = 439  ;;  %v592_v56 = vadd.f32 (%p562_p9), %v591_v55, %v590_v54 }
 0x228   : > { %v593_v57 = vrot.slane (%p562_p9), %v592_v56, 4 }
 0x22a   : > { %v594_v58 = vadd.f32 (%p562_p9), %v593_v57, %v592_v56 }
 0x22c   : > { %v595_v59 = vrot.slane (%p562_p9), %v594_v58, 2 }
 0x22e   : > { %v596_v60 = vadd.f32 %v595_v59, %v594_v58 }
 0x230   : > { %v597_v61 = vrot.slane %v596_v60, 1 }
 0x232   : > { %v2564_v62 = vadd.f32 %v597_v61, %v596_v60 }
 0x233 LB: >> { %s1154_s15 = scalar_lea.sflag [#allocation3], %s2164_s2  ;;  %s2164_s2 = sphi %s2162_s2, %s605_s2  }
 0x234   : >> { %s1155_s13 = scalar_lea.sflag %s1154_s15, 16 [#allocation3] }
 0x235   : >> { %2080 = dma.done.wait %s1155_s13, 16 }
 0x236   : >> { %2081 = vsyncadd %s1155_s13, 4294967280  ;;  %s605_s2 = sadd.s32 1, %s2164_s2  }
 0x237   : >> { %p602_p12 = scmp.ge.s32.totalorder %s605_s2, 16  }
 0x238   : > { %v636_v63 = vld [vmem:[#allocation6] sm:$0xff] (%p602_p12)  ;;  %v637_v0 = vld [vmem:[#allocation6 + $0x8] sm:$0xff] (%p602_p12)  ;;  %v638_v1 = vld [vmem:[#allocation6 + $0x10] sm:$0xff] (%p602_p12)  ;;  %v2172_v2 = vmov (%p602_p12), 0.0|0.0   ;;  %vm2173_vm0 = vmmov (%p602_p12), 0   ;;  %v2174_v5 = vmov (%p602_p12), 0.0  }
 0x239   : > { %604 = sbr.rel (!%p602_p12) target bundleno = 563 (0x233), region = 450  ;;  %1444 = vmatprep.subr.bf16.mxu0 (%p602_p12), %v2172_v2  ;;  %v1445_v3 = vpack.c.bf16 (%p602_p12), %v637_v0, %v636_v63  ;;  %v639_v4 = vld [vmem:[#allocation6 + $0x18] sm:$0xff] (%p602_p12)  ;;  %1406 = vmatprep.mubr.msk.f32.mxu0 (%p602_p12), %vm2173_vm0, %v2174_v5  ;;  %v640_v7 = vld [vmem:[#allocation6 + $0x20] sm:$0xff] (%p602_p12)  ;;  %v641_v9 = vld [vmem:[#allocation6 + $0x28] sm:$0xff] (%p602_p12)  ;;  %vm621_vm1 = vcmask (%p602_p12), 1040384   ;;  %vm623_vm2 = vcmask (%p602_p12), 1041408  }
 0x23a   : > { %1468 = vmatprep.subr.bf16.mxu1 (%p602_p12), %v2172_v2  ;;  %1441 = vmatprep.mubr.msk.f32.mxu1 (%p602_p12), %vm2173_vm0, %v2174_v5  ;;  %v1448_v6 = vpack.c.bf16 (%p602_p12), %v639_v4, %v638_v1  ;;  %v611_v10 = vld [vmem:[#allocation2 + $0x10] sm:$0xff] (%p602_p12)  ;;  %v612_v11 = vld [vmem:[#allocation2 + $0x18] sm:$0xff] (%p602_p12)  ;;  %v730_v13 = vld [vmem:[#allocation9] sm:$0xff] (%p602_p12)  ;;  %v1451_v16 = vpack.c.bf16 (%p602_p12), %v641_v9, %v640_v7  ;;  %v622_v23 = vsel (%p602_p12), %vm621_vm1, %v2408_v8, %v2434_v17  ;;  %vm625_vm3 = vcmask (%p602_p12), 1042432   ;;  %s1305_s12 = sshll.u32 (%p602_p12), %s2244_s0, 7  ;;  %s2685_s17 = scalar_lea.vmem (%p602_p12), [#allocation11], %s2349_s18 }
 0x23b   : > { %1446 = vmatpush3.bf16.msra.mxu0 (%p602_p12), %v1445_v3  ;;  %v613_v12 = vadd.f32 (%p602_p12), %v612_v11, %v611_v10  ;;  %v731_v14 = vld [vmem:[#allocation9 + $0x8] sm:$0xff] (%p602_p12)  ;;  %v732_v15 = vld [vmem:[#allocation9 + $0x10] sm:$0xff] (%p602_p12)  ;;  %v733_v19 = vld [vmem:[#allocation9 + $0x18] sm:$0xff] (%p602_p12)  ;;  %v624_v33 = vsel (%p602_p12), %vm623_vm2, %v622_v23, %v2460_v26  ;;  %vm627_vm4 = vcmask (%p602_p12), 1043456   ;;  %vm629_vm5 = vcmask (%p602_p12), 1044480   ;;  %s853_s6 = sshll.u32 (%p602_p12), %s2685_s17, 4  ;;  %s2687_s14 = smov (%p602_p12), %s2685_s17  ;;  %s2603_s6 = int_to_ptr.vmem [resolvable:$true] %s853_s6 }
 0x23c   : > { %1447 = vmatprep.subr.bf16.mxu0 (%p602_p12), %v2172_v2  ;;  %v1469_v18 = vpack.c.bf16 (%p602_p12), %v731_v14, %v730_v13  ;;  %v642_v20 = vld [vmem:[#allocation6 + $0x30] sm:$0xff] (%p602_p12)  ;;  %v643_v21 = vld [vmem:[#allocation6 + $0x38] sm:$0xff] (%p602_p12)  ;;  %v1472_v24 = vpack.c.bf16 (%p602_p12), %v733_v19, %v732_v15  ;;  %v734_v27 = vld [vmem:[#allocation9 + $0x20] sm:$0xff] (%p602_p12)  ;;  %v626_v38 = vsel (%p602_p12), %vm625_vm3, %v624_v33, %v2486_v35  ;;  %vm631_vm6 = vcmask (%p602_p12), 1045504   ;;  %s2686_s28 = sld [smem:[#allocation50_spill]] (%p602_p12)  ;;  %s2688_s29 = sand.u32 (%p602_p12), 1, %s2092_s8  }
 0x23d   : > { %v614_v22 = vrot.slane (%p602_p12), %v613_v12, 4  ;;  %v735_v28 = vld [vmem:[#allocation9 + $0x28] sm:$0xff] (%p602_p12)  ;;  %v1454_v29 = vpack.c.bf16 (%p602_p12), %v643_v21, %v642_v20  ;;  %v644_v30 = vld [vmem:[#allocation6 + $0x40] sm:$0xff] (%p602_p12)  ;;  %v736_v17 = vld [vmem:[#allocation9 + $0x30] sm:$0xff] (%p602_p12)  ;;  %v628_v26 = vsel (%p602_p12), %vm627_vm4, %v626_v38, %v2512_v44  ;;  %vm633_vm7 = vcmask (%p602_p12), 1046528   ;;  %s840_s30 = scalar_lea.sflag (%p602_p12), [#allocation8], %s2688_s29 }
 0x23e   : > { %1470 = vmatpush3.bf16.msra.mxu1 (%p602_p12), %v1469_v18  ;;  %v645_v31 = vld [vmem:[#allocation6 + $0x48] sm:$0xff] (%p602_p12)  ;;  %v1475_v8 = vpack.c.bf16 (%p602_p12), %v735_v28, %v734_v27  ;;  %v737_v34 = vld [vmem:[#allocation9 + $0x38] sm:$0xff] (%p602_p12)  ;;  %v646_v39 = vld [vmem:[#allocation6 + $0x50] sm:$0xff] (%p602_p12)  ;;  %v630_v48 = vsel (%p602_p12), %vm629_vm5, %v628_v26, %v2538_v53  ;;  %v824_v9 = vlaneseq (%p602_p12)  ;;  %s1948_s20 = scalar_lea.vmem (%p602_p12), %s2603_s6, 128  ;;  %p2689_p13 = scmp.ne.s32.totalorder (%p602_p12), %s2673_s16, 0 }
 0x23f   : > { %1449 = vmatpush3.bf16.msra.mxu0 (%p602_p12), %v1448_v6  ;;  %v615_v25 = vadd.f32 (%p602_p12), %v614_v22, %v613_v12  ;;  %1471 = vmatprep.subr.bf16.mxu1 (%p602_p12), %v2172_v2  ;;  %v1457_v36 = vpack.c.bf16 (%p602_p12), %v645_v31, %v644_v30  ;;  %v647_v40 = vld [vmem:[#allocation6 + $0x58] sm:$0xff] (%p602_p12)  ;;  %v1478_v41 = vpack.c.bf16 (%p602_p12), %v737_v34, %v736_v17  ;;  %v738_v42 = vld [vmem:[#allocation9 + $0x40] sm:$0xff] (%p602_p12)  ;;  %v739_v43 = vld [vmem:[#allocation9 + $0x48] sm:$0xff] (%p602_p12)  ;;  %p1949_p1 = scmp.ne.s32.totalorder (%p602_p12), %s2603_s6, %s1948_s20  ;;  %s2175_s0 = smov (%p602_p12), [#allocation11]  }
 0x240   : > { %1450 = vmatprep.subr.bf16.mxu0 %v2172_v2  ;;  %v1460_v45 = vpack.c.bf16 %v647_v40, %v646_v39  ;;  %v648_v35 = vld [vmem:[#allocation6 + $0x60] sm:$0xff]  ;;  %v649_v47 = vld [vmem:[#allocation6 + $0x68] sm:$0xff]  ;;  %v1481_v49 = vpack.c.bf16 %v739_v43, %v738_v42  ;;  %v740_v44 = vld [vmem:[#allocation9 + $0x50] sm:$0xff]  ;;  %v632_v56 = vsel %vm631_vm6, %v630_v48, %v2564_v62  ;;  %v825_v11 = vand.u32 127, %v824_v9  ;;  %s1952_s11 = sshll.u32 %s2175_s0, 4  ;;  %s1953_s11 = int_to_ptr.vmem [resolvable:$false] %s1952_s11 }
 0x241   : > { %v616_v32 = vrot.slane %v615_v25, 2  ;;  %v741_v50 = vld [vmem:[#allocation9 + $0x58] sm:$0xff]  ;;  %v1463_v51 = vpack.c.bf16 %v649_v47, %v648_v35  ;;  %v650_v54 = vld [vmem:[#allocation6 + $0x70] sm:$0xff]  ;;  %v742_v53 = vld [vmem:[#allocation9 + $0x60] sm:$0xff]  ;;  %p1950_p4 = pnand %p1949_p1, %p2689_p13  ;;  %s1954_s19 = scalar_lea.vmem %s1953_s11, 256 }
 0x242   : > { %1473 = vmatpush3.bf16.msra.mxu1 %v1472_v24  ;;  %v651_v55 = vld [vmem:[#allocation6 + $0x78] sm:$0xff]  ;;  %v1484_v57 = vpack.c.bf16 %v741_v50, %v740_v44  ;;  %v743_v58 = vld [vmem:[#allocation9 + $0x68] sm:$0xff]  ;;  %v744_v62 = vld [vmem:[#allocation9 + $0x70] sm:$0xff]  ;;  %vm826_vm8 = vcmp.lt.s32.totalorder %v825_v11, 2  ;;  %s2601_s21 = scalar_lea.hbm %s2686_s28, %s1305_s12  ;;  %p1955_p6 = scmp.lt.s32.totalorder %s2603_s6, %s1953_s11 }
 0x243   : > { %1452 = vmatpush3.bf16.msra.mxu0 %v1451_v16  ;;  %1474 = vmatprep.subr.bf16.mxu1 %v2172_v2  ;;  %v617_v37 = vadd.f32 %v616_v32, %v615_v25  ;;  %v1466_v59 = vpack.c.bf16 %v651_v55, %v650_v54  ;;  %v1487_v61 = vpack.c.bf16 %v743_v58, %v742_v53  ;;  %v745_v0 = vld [vmem:[#allocation9 + $0x78] sm:$0xff]  ;;  %v1302_v3 = vld [vmem:[%s2650_s3] ss:$0 sm:$0xff]  ;;  %p1951_p5 = pneg %p1950_p4  ;;  %p1956_p7 = scmp.lt.s32.totalorder %s1954_s19, %s1948_s20 }
 0x244   : > { %1453 = vmatprep.subr.bf16.mxu0 %v2172_v2  ;;  %v1490_v1 = vpack.c.bf16 %v745_v0, %v744_v62  ;;  %v1303_v10 = vld [vmem:[%s2652_s5] ss:$0 sm:$0xff] }
 0x245   : > { %v618_v46 = vrot.slane %v617_v37, 1  ;;  %p1957_p10 = por %p1956_p7, %p1955_p6 }
 0x246   : > { %1476 = vmatpush3.bf16.msra.mxu1 %v1475_v8 }
 0x247   : > { %1455 = vmatpush3.bf16.msra.mxu0 %v1454_v29  ;;  %1477 = vmatprep.subr.bf16.mxu1 %v2172_v2  ;;  %v619_v52 = vadd.f32 %v618_v46, %v617_v37  ;;  %p1958_p11 = pnand %p1957_p10, %p1951_p5 }
 0x248   : > { %1456 = vmatprep.subr.bf16.mxu0 %v2172_v2 }
 0x249   : > { %v634_v60 = vsel %vm633_vm7, %v632_v56, %v619_v52 }
 0x24a   : > { %1479 = vmatpush3.bf16.msra.mxu1 %v1478_v41  ;;  %v635_v63 = vmul.f32 0.0625, %v634_v60 }
 0x24b   : > { %1458 = vmatpush3.bf16.msra.mxu0 %v1457_v36  ;;  %1480 = vmatprep.subr.bf16.mxu1 %v2172_v2 }
 0x24c   : > { %1459 = vmatprep.subr.bf16.mxu0 %v2172_v2 }
 0x24e   : > { %1482 = vmatpush3.bf16.msra.mxu1 %v1481_v49 }
 0x24f   : > { %1461 = vmatpush3.bf16.msra.mxu0 %v1460_v45  ;;  %1483 = vmatprep.subr.bf16.mxu1 %v2172_v2 }
 0x250   : > { %1462 = vmatprep.subr.bf16.mxu0 %v2172_v2 }
 0x252   : > { %1485 = vmatpush3.bf16.msra.mxu1 %v1484_v57 }
 0x253   : > { %1464 = vmatpush3.bf16.msra.mxu0 %v1463_v51  ;;  %1486 = vmatprep.subr.bf16.mxu1 %v2172_v2 }
 0x254   : > { %1465 = vmatprep.subr.bf16.mxu0 %v2172_v2 }
 0x256   : > { %1488 = vmatpush3.bf16.msra.mxu1 %v1487_v61 }
 0x257   : > { %1467 = vmatpush3.bf16.msra.mxu0 %v1466_v59  ;;  %1489 = vmatprep.subr.bf16.mxu1 %v2172_v2 }
 0x25a   : > { %1407 = vmatmul.mubr.f32.vlgmr.msra.gmra.mrb[0].mxu0 %v635_v63  ;;  %1491 = vmatpush3.bf16.msra.mxu1 %v1490_v1 }
 0x32d   : > { %v725_v4 = vpop.f32.mrb[0].mxu0 }
 0x32e   : > { %v726_v5 = vadd.f32 %v1302_v3, %v725_v4  ;;  %v1408_v6 = vpop.f32.mrb[1].mxu0 }
 0x330   : > { %v729_v7 = vmax.f32 %v726_v5, 0.0 }
 0x332   : > { %1442 = vmatmul.mubr.f32.vlgmr.msra.gmra.mrb[0].mxu1 %v729_v7 }
 0x405   : > { %v819_v2 = vpop.f32.mrb[0].mxu1 }
 0x406   : > { %v820_v12 = vadd.f32 %v1303_v10, %v819_v2  ;;  %v1443_v13 = vpop.f32.mrb[1].mxu1 }
 0x408   : > { %v823_v14 = vmax.f32 %v820_v12, 0.0 }
 0x40a   : > { %v827_v15 = vsel %vm826_vm8, %v823_v14, -inf }
 0x40b   : > { %828 = vmax.xlane.f32.xlu0 %v827_v15 }
 0x498   : > { %v829_v16 = vpop.xlane.xlu0 %828 }
 0x499   : > { %v830_v18 = vsub.f32 %v827_v15, %v829_v16 }
 0x49b   : > { %v831_v19 = vmul.f32 1.442695, %v830_v18 }
 0x49d   : > { %1686 = vpow2.f32 %v831_v19 }
 0x4a7   : > { %v1687_v20 = vpop.eup %1686 }
 0x4a8   : > { %833 = vadd.xlane.f32.xlu0 %v1687_v20 }
 0x535   : > { %v834_v21 = vpop.xlane.xlu0 %833 }
 0x536   : > { %1688 = vlog2.f32 %v834_v21 }
 0x540   : > { %v1689_v22 = vpop.eup %1688 }
 0x541   : > { %v836_v23 = vmul.f32 0.6931472, %v1689_v22 }
 0x543   : > { %v837_v24 = vsub.f32 %v830_v18, %v836_v23 }
 0x545   : > { %838 = vst [vmem:[%s2687_s14] sm:$0xff] %v837_v24 }
 0x546   : > { %1961 = shalt.err (!%p1958_p11)
}
 0x547   : > { %s1962_s18 = scalar_lea.hbm %s2601_s21, 128  ;;  %s1966_s24 = scalar_lea.hbm %s2686_s28, 256 }
 0x548   : > { %p1963_p0 = scmp.ne.s32.totalorder %s2601_s21, %s1962_s18  ;;  %p1967_p3 = scmp.lt.u32.totalorder %s2601_s21, %s2686_s28 }
 0x549   : > { %p1968_p9 = scmp.lt.u32.totalorder %s1966_s24, %s1962_s18  ;;  %p1970_p1 = scmp.lt.u32.totalorder %s1962_s18, %s2601_s21 }
 0x54a   : > { %p1964_p2 = pnand %p1963_p0, %p2689_p13 }
 0x54b   : > { %p1969_p12 = por %p1968_p9, %p1967_p3 }
 0x54c   : > { %p1965_p8 = pneg %p1964_p2 }
 0x54d   : > { %p1971_p4 = por %p1970_p1, %p1969_p12 }
 0x54f   : > { %p1972_p5 = pnand %p1971_p4, %p1965_p8 }
 0x551   : > { %1975 = shalt.err (!%p1972_p5)
}
 0x552   : > { %1500 = dma.vmem_to_hbm [thread:$0]  (%p2689_p13), %s2603_s6, 128, %s2601_s21, %s840_s30  }
 0x553 PF: > { %s2690_s15 = sld [smem:[#allocation44_spill]]  ;;  %s2691_s13 = sld [smem:[#allocation42_spill]] }
 0x554   : > { %s2692_s9 = sld [smem:[#allocation47_spill]] }
 0x559   : > { %p1517_p6 = scmp.ge.s32.totalorder %s2690_s15, 2  ;;  %s865_s23 = sand.u32 1, %s2691_s13  }
 0x55a   : > { %p2693_p7 = scmp.ne.s32.totalorder %s2692_s9, 0  ;;  %s866_s27 = scalar_lea.sflag [#allocation8], %s865_s23 }
 0x55c   : > { %p1510_p10 = pnand %p1517_p6, %p2693_p7 }
 0x55e   : > { %2083 = dma.done.wait (!%p1510_p10), %s866_s27, 128  }
 0x55f   : > { %2085 = vsyncadd (!%p1510_p10), %s866_s27, 4294967168  ;;  %s2694_s10 = sld [smem:[#allocation45_spill]]  ;;  %s2695_s4 = sld [smem:[#allocation43_spill]] }
 0x560   : > { %s2696_s9 = sld [smem:[#allocation46_spill]]  ;;  %s2697_s7 = smov %s2092_s8 }
 0x565   : > { %p22_p11 = scmp.ge.s32.totalorder %s2694_s10, 4   ;;  %s2698_s8 = smov %s2695_s4 }
 0x567   :  { %24 = sbr.rel (!%p22_p11) target bundleno = 18 (0x12), region = 461 }
 0x56e   :  { %871 = vsyncpa [#allocation7], 1 }
 0x56f   :  { %873 = vsyncpa [#allocation7 + $0x1], 1 }
 0x570   :  { %874 = vsyncpa [#allocation10], 1 }
 0x571   :  { %875 = vsyncpa [#allocation8], 1 }
 0x572   :  { %877 = vsyncpa [#allocation8 + $0x1], 1 }
 0x573   :  { %878 = vsyncmov [#allocation3] }
 0x576   :  { %s879_s16 = vpop.sfrf %878 }
 0x577   :  { %p1308_p13 = scmp.ne.s32.totalorder %s879_s16, 0 }
 0x579   :  { %883 = shalt.err (%p1308_p13)  }
 0x57a   :  { %885 = vsyncmov [#allocation3 + $0x1] }
 0x57d   :  { %s886_s12 = vpop.sfrf %885 }
 0x57e   :  { %p1309_p0 = scmp.ne.s32.totalorder %s886_s12, 0 }
 0x580   :  { %890 = shalt.err (%p1309_p0)  }
 0x581   :  { %892 = vsyncmov [#allocation3 + $0x2] }
 0x584   :  { %s893_s17 = vpop.sfrf %892 }
 0x585   :  { %p1310_p2 = scmp.ne.s32.totalorder %s893_s17, 0 }
 0x587   :  { %897 = shalt.err (%p1310_p2)  }
 0x588   :  { %899 = vsyncmov [#allocation3 + $0x3] }
 0x58b   :  { %s900_s6 = vpop.sfrf %899 }
 0x58c   :  { %p1311_p8 = scmp.ne.s32.totalorder %s900_s6, 0 }
 0x58e   :  { %904 = shalt.err (%p1311_p8)  }
 0x58f   :  { %906 = vsyncmov [#allocation3 + $0x4] }
 0x592   :  { %s907_s1 = vpop.sfrf %906 }
 0x593   :  { %p1312_p3 = scmp.ne.s32.totalorder %s907_s1, 0 }
 0x595   :  { %911 = shalt.err (%p1312_p3)  }
 0x596   :  { %913 = vsyncmov [#allocation3 + $0x5] }
 0x599   :  { %s914_s3 = vpop.sfrf %913 }
 0x59a   :  { %p1313_p9 = scmp.ne.s32.totalorder %s914_s3, 0 }
 0x59c   :  { %918 = shalt.err (%p1313_p9)  }
 0x59d   :  { %920 = vsyncmov [#allocation3 + $0x6] }
 0x5a0   :  { %s921_s5 = vpop.sfrf %920 }
 0x5a1   :  { %p1314_p12 = scmp.ne.s32.totalorder %s921_s5, 0 }
 0x5a3   :  { %925 = shalt.err (%p1314_p12)  }
 0x5a4   :  { %927 = vsyncmov [#allocation3 + $0x7] }
 0x5a7   :  { %s928_s8 = vpop.sfrf %927 }
 0x5a8   :  { %p1315_p1 = scmp.ne.s32.totalorder %s928_s8, 0 }
 0x5aa   :  { %932 = shalt.err (%p1315_p1)  }
 0x5ab   :  { %934 = vsyncmov [#allocation3 + $0x8] }
 0x5ae   :  { %s935_s7 = vpop.sfrf %934 }
 0x5af   :  { %p1316_p4 = scmp.ne.s32.totalorder %s935_s7, 0 }
 0x5b1   :  { %939 = shalt.err (%p1316_p4)  }
 0x5b2   :  { %941 = vsyncmov [#allocation3 + $0x9] }
 0x5b5   :  { %s942_s10 = vpop.sfrf %941 }
 0x5b6   :  { %p1317_p5 = scmp.ne.s32.totalorder %s942_s10, 0 }
 0x5b8   :  { %946 = shalt.err (%p1317_p5)  }
 0x5b9   :  { %948 = vsyncmov [#allocation3 + $0xa] }
 0x5bc   :  { %s949_s28 = vpop.sfrf %948 }
 0x5bd   :  { %p1318_p6 = scmp.ne.s32.totalorder %s949_s28, 0 }
 0x5bf   :  { %953 = shalt.err (%p1318_p6)  }
 0x5c0   :  { %955 = vsyncmov [#allocation3 + $0xb] }
 0x5c3   :  { %s956_s21 = vpop.sfrf %955 }
 0x5c4   :  { %p1319_p7 = scmp.ne.s32.totalorder %s956_s21, 0 }
 0x5c6   :  { %960 = shalt.err (%p1319_p7)  }
 0x5c7   :  { %962 = vsyncmov [#allocation3 + $0xc] }
 0x5ca   :  { %s963_s14 = vpop.sfrf %962 }
 0x5cb   :  { %p1320_p10 = scmp.ne.s32.totalorder %s963_s14, 0 }
 0x5cd   :  { %967 = shalt.err (%p1320_p10)  }
 0x5ce   :  { %969 = vsyncmov [#allocation3 + $0xd] }
 0x5d1   :  { %s970_s29 = vpop.sfrf %969 }
 0x5d2   :  { %p1321_p11 = scmp.ne.s32.totalorder %s970_s29, 0 }
 0x5d4   :  { %974 = shalt.err (%p1321_p11)  }
 0x5d5   :  { %976 = vsyncmov [#allocation3 + $0xe] }
 0x5d8   :  { %s977_s30 = vpop.sfrf %976 }
 0x5d9   :  { %p1322_p13 = scmp.ne.s32.totalorder %s977_s30, 0 }
 0x5db   :  { %981 = shalt.err (%p1322_p13)  }
 0x5dc   :  { %983 = vsyncmov [#allocation3 + $0xf] }
 0x5df   :  { %s984_s20 = vpop.sfrf %983 }
 0x5e0   :  { %p1323_p0 = scmp.ne.s32.totalorder %s984_s20, 0 }
 0x5e2   :  { %988 = shalt.err (%p1323_p0)  }
 0x5e3   :  { %990 = vsyncmov [#allocation3 + $0x10] }
 0x5e6   :  { %s991_s0 = vpop.sfrf %990 }
 0x5e7   :  { %p1324_p2 = scmp.ne.s32.totalorder %s991_s0, 0 }
 0x5e9   :  { %995 = shalt.err (%p1324_p2)  }
 0x5ea   :  { %997 = vsyncmov [#allocation3 + $0x11] }
 0x5ed   :  { %s998_s11 = vpop.sfrf %997 }
 0x5ee   :  { %p1325_p8 = scmp.ne.s32.totalorder %s998_s11, 0 }
 0x5f0   :  { %1002 = shalt.err (%p1325_p8)  }
 0x5f1   :  { %1004 = vsyncmov [#allocation3 + $0x12] }
 0x5f4   :  { %s1005_s19 = vpop.sfrf %1004 }
 0x5f5   :  { %p1326_p3 = scmp.ne.s32.totalorder %s1005_s19, 0 }
 0x5f7   :  { %1009 = shalt.err (%p1326_p3)  }
 0x5f8   :  { %1011 = vsyncmov [#allocation3 + $0x13] }
 0x5fb   :  { %s1012_s18 = vpop.sfrf %1011 }
 0x5fc   :  { %p1327_p9 = scmp.ne.s32.totalorder %s1012_s18, 0 }
 0x5fe   :  { %1016 = shalt.err (%p1327_p9)  }
 0x5ff   :  { %1018 = vsyncmov [#allocation3 + $0x14] }
 0x602   :  { %s1019_s22 = vpop.sfrf %1018 }
 0x603   :  { %p1328_p12 = scmp.ne.s32.totalorder %s1019_s22, 0 }
 0x605   :  { %1023 = shalt.err (%p1328_p12)  }
 0x606   :  { %1025 = vsyncmov [#allocation3 + $0x15] }
 0x609   :  { %s1026_s25 = vpop.sfrf %1025 }
 0x60a   :  { %p1329_p1 = scmp.ne.s32.totalorder %s1026_s25, 0 }
 0x60c   :  { %1030 = shalt.err (%p1329_p1)  }
 0x60d   :  { %1032 = vsyncmov [#allocation3 + $0x16] }
 0x610   :  { %s1033_s24 = vpop.sfrf %1032 }
 0x611   :  { %p1330_p4 = scmp.ne.s32.totalorder %s1033_s24, 0 }
 0x613   :  { %1037 = shalt.err (%p1330_p4)  }
 0x614   :  { %1039 = vsyncmov [#allocation3 + $0x17] }
 0x617   :  { %s1040_s26 = vpop.sfrf %1039 }
 0x618   :  { %p1331_p5 = scmp.ne.s32.totalorder %s1040_s26, 0 }
 0x61a   :  { %1044 = shalt.err (%p1331_p5)  }
 0x61b   :  { %1046 = vsyncmov [#allocation3 + $0x18] }
 0x61e   :  { %s1047_s2 = vpop.sfrf %1046 }
 0x61f   :  { %p1332_p6 = scmp.ne.s32.totalorder %s1047_s2, 0 }
 0x621   :  { %1051 = shalt.err (%p1332_p6)  }
 0x622   :  { %1053 = vsyncmov [#allocation3 + $0x19] }
 0x625   :  { %s1054_s15 = vpop.sfrf %1053 }
 0x626   :  { %p1333_p7 = scmp.ne.s32.totalorder %s1054_s15, 0 }
 0x628   :  { %1058 = shalt.err (%p1333_p7)  }
 0x629   :  { %1060 = vsyncmov [#allocation3 + $0x1a] }
 0x62c   :  { %s1061_s13 = vpop.sfrf %1060 }
 0x62d   :  { %p1334_p10 = scmp.ne.s32.totalorder %s1061_s13, 0 }
 0x62f   :  { %1065 = shalt.err (%p1334_p10)  }
 0x630   :  { %1067 = vsyncmov [#allocation3 + $0x1b] }
 0x633   :  { %s1068_s9 = vpop.sfrf %1067 }
 0x634   :  { %p1335_p11 = scmp.ne.s32.totalorder %s1068_s9, 0 }
 0x636   :  { %1072 = shalt.err (%p1335_p11)  }
 0x637   :  { %1074 = vsyncmov [#allocation3 + $0x1c] }
 0x63a   :  { %s1075_s23 = vpop.sfrf %1074 }
 0x63b   :  { %p1336_p13 = scmp.ne.s32.totalorder %s1075_s23, 0 }
 0x63d   :  { %1079 = shalt.err (%p1336_p13)  }
 0x63e   :  { %1081 = vsyncmov [#allocation3 + $0x1d] }
 0x641   :  { %s1082_s27 = vpop.sfrf %1081 }
 0x642   :  { %p1337_p0 = scmp.ne.s32.totalorder %s1082_s27, 0 }
 0x644   :  { %1086 = shalt.err (%p1337_p0)  }
 0x645   :  { %1088 = vsyncmov [#allocation3 + $0x1e] }
 0x648   :  { %s1089_s4 = vpop.sfrf %1088 }
 0x649   :  { %p1338_p2 = scmp.ne.s32.totalorder %s1089_s4, 0 }
 0x64b   :  { %1093 = shalt.err (%p1338_p2)  }
 0x64c   :  { %1095 = vsyncmov [#allocation3 + $0x1f] }
 0x64f   :  { %s1096_s16 = vpop.sfrf %1095 }
 0x650   :  { %p1339_p8 = scmp.ne.s32.totalorder %s1096_s16, 0 }
 0x652   :  { %1100 = shalt.err (%p1339_p8)  }

</bundles_post_ra>
